<compile_context>
chip_gen: v7x
topology: tpu7x:2x2x1
jax: 0.10.0
libtpu: 0.0.40
codegen_flags: <defaults>
</compile_context>

<pallas_src>
import functools

import numpy as np
import jax
import jax.numpy as jnp
from jax.experimental import pallas as pl
from jax.experimental.pallas import tpu as pltpu


def _round_up(x, m):
    return ((x + m - 1) // m) * m


# --------------------------------------------------------------------------
# Single fused kernel; one grid step = one batch tile of `tb` items.
#   p1_ref  : (tb*p1p, K1p)  bf16 conv1 im2col patches (rows padded per item)
#   w1_ref  : (K1p, 32)      bf16 conv1 weight (K zero-padded)
#   b1_ref  : (1, 32)        f32
#   w2_ref  : (9*32, 64)     f32 conv2 weight, one 32x64 block per tap
#   b2_ref  : (1, 64)        f32
#   msk_ref : (p1p, 64)      0 at valid conv2 positions, -1e30 elsewhere
#   sc_ref  : (tb, S)        scalar-branch input
#   wf*/bf* : fc1/fc2, fc3 split into [hs-part, wf3a] + [hc-part, wf3b]
#   wav/bav : fused heads padded to 128 lanes (cols [0,A)=fca, col A=fcv)
#   out_ref : (tb, 128)      lanes [0,A)=softmax probs, lane A=value
#   h1s_ref : VMEM scratch (tb*p1p + pad, 32) f32 for the conv1 activation
# --------------------------------------------------------------------------
def fused_model_kernel(p1_ref, w1_ref, b1_ref, w2_ref, b2_ref, msk_ref, sc_ref,
                       wf1_ref, bf1_ref, wf2_ref, bf2_ref,
                       wf3a_ref, wf3b_ref, bf3_ref, wav_ref, bav_ref,
                       out_ref, h1s_ref, *, tb, p1p, ow1, action_dim):
    f32 = jnp.float32
    rows = tb * p1p
    c1 = w1_ref.shape[1]           # 32
    c2 = w2_ref.shape[1]           # 64

    # conv1: dense im2col matmul (bf16 x bf16 -> f32) + bias + relu
    h1 = jnp.dot(p1_ref[...], w1_ref[...], preferred_element_type=f32)
    h1 = jnp.maximum(h1 + b1_ref[...], 0.0)

    # Stash conv1 activation in VMEM scratch (plus zeroed tail rows) so the
    # 9 conv2 taps are plain static ref slices (no value reshuffles).
    h1s_ref[pl.ds(0, rows), :] = h1
    pad = h1s_ref.shape[0] - rows
    h1s_ref[pl.ds(rows, pad), :] = jnp.zeros((pad, c1), f32)

    # conv2: accumulate 9 tap-shifted slices x (32, 64) weight blocks.
    # Tap (ky, kx) of output position p needs conv1 position p + ky*ow1 + kx;
    # rows that shift past an item's block only feed masked positions.
    h2 = jnp.zeros((rows, c2), f32)
    for k in range(9):
        off = (k // 3) * ow1 + (k % 3)
        tap = h1s_ref[pl.ds(off, rows), :]
        h2 = h2 + jnp.dot(tap, w2_ref[pl.ds(k * c1, c1), :],
                          preferred_element_type=f32)
    h2 = h2 + b2_ref[...]

    # spatial amax over valid conv2 positions only
    hs = jnp.max(h2.reshape(tb, p1p, c2) + msk_ref[...], axis=1)     # (tb, 64)

    # scalar branch: fc1 -> relu -> fc2 -> relu
    hc = jnp.dot(sc_ref[...], wf1_ref[...], preferred_element_type=f32)
    hc = jnp.maximum(hc + bf1_ref[...], 0.0)
    hc = jnp.dot(hc, wf2_ref[...], preferred_element_type=f32)
    hc = jnp.maximum(hc + bf2_ref[...], 0.0)

    # fc3 on concat([hs, hc]) without materializing the concat
    h = (jnp.dot(hs, wf3a_ref[...], preferred_element_type=f32)
         + jnp.dot(hc, wf3b_ref[...], preferred_element_type=f32)
         + bf3_ref[...])
    h = jnp.maximum(h, 0.0)

    # fused action + value head, padded to 128 lanes -> one lane-dense store
    head = jnp.dot(h, wav_ref[...], preferred_element_type=f32) + bav_ref[...]
    lane = jax.lax.broadcasted_iota(jnp.int32, head.shape, 1)
    logits = jnp.where(lane < action_dim, head, -1e30)
    m = jnp.max(logits, axis=-1, keepdims=True)
    e = jnp.exp(logits - m)
    denom = jnp.sum(e, axis=-1, keepdims=True)
    probs = e * pl.reciprocal(denom, approx=True)
    out_ref[...] = jnp.where(lane == action_dim, head, probs)


# --------------------------------------------------------------------------
# Plain-JAX glue (trace-time packing / im2col only)
# --------------------------------------------------------------------------
def _extract_patches(x, k, stride):
    """x: (B, H, W, C) -> (B, OH*OW, k*k*C) im2col patches ((ky,kx,c) order)."""
    B, H, W, C = x.shape
    oh = (H - k) // stride + 1
    ow = (W - k) // stride + 1
    cols = []
    for ky in range(k):
        for kx in range(k):
            cols.append(x[:, ky:ky + stride * oh:stride,
                           kx:kx + stride * ow:stride, :])     # (B, oh, ow, C)
    p = jnp.stack(cols, axis=3)                                 # (B, oh, ow, k*k, C)
    return p.reshape(B, oh * ow, k * k * C), oh, ow


def pack_weights(params):
    """Repack PyTorch-layout parameters into matmul-friendly matrices (once)."""
    cin = params["w_conv1"].shape[1]
    k1 = 25 * cin
    k1p = _round_up(k1, 128)

    w1m = jnp.transpose(params["w_conv1"], (2, 3, 1, 0)).reshape(k1, 32)
    w1 = jnp.zeros((k1p, 32), jnp.float32).at[:k1].set(w1m).astype(jnp.bfloat16)
    b1 = params["b_conv1"].reshape(1, 32)

    w2 = jnp.transpose(params["w_conv2"], (2, 3, 1, 0)).reshape(9 * 32, 64)
    b2 = params["b_conv2"].reshape(1, 64)

    wf3 = params["w_fc3"].T                                     # (128, 128)
    A = params["w_fca"].shape[0]
    head_p = _round_up(A + 1, 128)
    wav = jnp.zeros((128, head_p), jnp.float32)
    wav = wav.at[:, :A].set(params["w_fca"].T)
    wav = wav.at[:, A:A + 1].set(params["w_fcv"].T)
    bav = jnp.zeros((1, head_p), jnp.float32)
    bav = bav.at[0, :A].set(params["b_fca"])
    bav = bav.at[0, A].set(params["b_fcv"][0])

    return dict(
        w1=w1, b1=b1, w2=w2, b2=b2,
        wf1=params["w_fc1"].T, bf1=params["b_fc1"].reshape(1, -1),
        wf2=params["w_fc2"].T, bf2=params["b_fc2"].reshape(1, -1),
        wf3a=wf3[:64], wf3b=wf3[64:], bf3=params["b_fc3"].reshape(1, -1),
        wav=wav, bav=bav,
    )


@functools.partial(jax.jit, static_argnames=("action_dim",))
def model_forward(packed, spatial_nhwc, scalar, *, action_dim):
    B, H, W, cin = spatial_nhwc.shape
    S = scalar.shape[1]
    k1p = packed["w1"].shape[0]
    head_p = packed["wav"].shape[1]
    c2 = packed["w2"].shape[1]

    # conv1 im2col patches; rows padded to a sublane multiple per batch item,
    # K padded to 128 lanes, bf16 (halves the dominant HBM stream).
    p1, oh1, ow1 = _extract_patches(spatial_nhwc, 5, 2)          # (B, P1, 25*cin)
    P1 = oh1 * ow1
    k1 = p1.shape[-1]
    P1p = _round_up(P1, 8)

    # Batch tiling: TB=32 at large batch (M = 32*P1p is a multiple of 256 for
    # v6e/v7x MXU; v5e saturates earlier), whole batch at small B.
    TB = B if B <= 32 else 32
    Bp = _round_up(B, TB)

    p1 = jnp.pad(p1, ((0, Bp - B), (0, P1p - P1), (0, k1p - k1)))
    p1 = p1.reshape(Bp * P1p, k1p).astype(jnp.bfloat16)
    sc = scalar if Bp == B else jnp.pad(scalar, ((0, Bp - B), (0, 0)))

    # conv2 valid-position mask (0 at valid (y, x), -1e30 at border / padding)
    oh2, ow2 = oh1 - 2, ow1 - 2
    msk_np = np.full((P1p, c2), -1e30, np.float32)
    for y in range(oh2):
        msk_np[y * ow1:y * ow1 + ow2, :] = 0.0
    msk = jnp.asarray(msk_np)

    rows_blk = TB * P1p
    pad_rows = _round_up(2 * ow1 + 3, 8)       # >= largest tap offset
    grid = (Bp // TB,)

    def const_spec(arr):
        nd = arr.ndim
        return pl.BlockSpec(arr.shape, lambda i, _n=nd: (0,) * _n)

    in_specs = [
        pl.BlockSpec((rows_blk, k1p), lambda i: (i, 0)),     # p1 (batch-tiled)
        const_spec(packed["w1"]), const_spec(packed["b1"]),
        const_spec(packed["w2"]), const_spec(packed["b2"]),
        const_spec(msk),
        pl.BlockSpec((TB, S), lambda i: (i, 0)),             # scalar (batch-tiled)
        const_spec(packed["wf1"]), const_spec(packed["bf1"]),
        const_spec(packed["wf2"]), const_spec(packed["bf2"]),
        const_spec(packed["wf3a"]), const_spec(packed["wf3b"]),
        const_spec(packed["bf3"]),
        const_spec(packed["wav"]), const_spec(packed["bav"]),
    ]
    out_spec = pl.BlockSpec((TB, head_p), lambda i: (i, 0))

    flops = Bp * (P1p * k1p * 32 * 2 + 9 * P1p * 32 * 64 * 2
                  + S * 64 * 2 + 64 * 64 * 2 + 2 * 64 * 128 * 2
                  + 128 * head_p * 2)
    weight_bytes = sum(int(np.prod(v.shape)) * v.dtype.itemsize
                       for v in packed.values())
    bytes_accessed = int(p1.size * 2 + sc.size * 4 + Bp * head_p * 4
                         + msk.size * 4 + weight_bytes)

    kernel = functools.partial(fused_model_kernel, tb=TB, p1p=P1p, ow1=ow1,
                               action_dim=action_dim)
    out = pl.pallas_call(
        kernel,
        out_shape=jax.ShapeDtypeStruct((Bp, head_p), jnp.float32),
        grid=grid,
        in_specs=in_specs,
        out_specs=out_spec,
        scratch_shapes=[pltpu.VMEM((rows_blk + pad_rows, 32), jnp.float32)],
        compiler_params=pltpu.CompilerParams(
            dimension_semantics=("parallel",),
            vmem_limit_bytes=32 * 1024 * 1024),
        cost_estimate=pl.CostEstimate(flops=int(flops),
                                      transcendentals=int(Bp * head_p),
                                      bytes_accessed=bytes_accessed),
    )(p1, packed["w1"], packed["b1"], packed["w2"], packed["b2"], msk, sc,
      packed["wf1"], packed["bf1"], packed["wf2"], packed["bf2"],
      packed["wf3a"], packed["wf3b"], packed["bf3"],
      packed["wav"], packed["bav"])

    a = out[:B, :action_dim]
    v = out[:B, action_dim:action_dim + 1]
    return a, v


# --------------------------------------------------------------------------
# Deterministic parameter init (PyTorch-style uniform bounds, synthetic)
# --------------------------------------------------------------------------
def init_params(key, spatial_dim, scalar_dim, action_dim):
    ks = jax.random.split(key, 14)

    def unif(k, shape, fan_in):
        bound = 1.0 / float(fan_in) ** 0.5
        return jax.random.uniform(k, shape, jnp.float32, -bound, bound)

    return dict(
        w_conv1=unif(ks[0], (32, spatial_dim, 5, 5), spatial_dim * 25),
        b_conv1=unif(ks[1], (32,), spatial_dim * 25),
        w_conv2=unif(ks[2], (64, 32, 3, 3), 32 * 9),
        b_conv2=unif(ks[3], (64,), 32 * 9),
        w_fc1=unif(ks[4], (64, scalar_dim), scalar_dim),
        b_fc1=unif(ks[5], (64,), scalar_dim),
        w_fc2=unif(ks[6], (64, 64), 64),
        b_fc2=unif(ks[7], (64,), 64),
        w_fc3=unif(ks[8], (128, 128), 128),
        b_fc3=unif(ks[9], (128,), 128),
        w_fcv=unif(ks[10], (1, 128), 128),
        b_fcv=unif(ks[11], (1,), 128),
        w_fca=unif(ks[12], (action_dim, 128), 128),
        b_fca=unif(ks[13], (action_dim,), 128),
    )


# Pure-JAX reference (mirrors the PyTorch forward) for validation
def reference_forward(params, spatial_nhwc, scalar):
    x = jnp.transpose(spatial_nhwc, (0, 3, 1, 2))               # NCHW
    hs = jax.lax.conv_general_dilated(
        x, params["w_conv1"], (2, 2), "VALID",
        dimension_numbers=("NCHW", "OIHW", "NCHW"))
    hs = jax.nn.relu(hs + params["b_conv1"][None, :, None, None])
    hs = jax.lax.conv_general_dilated(
        hs, params["w_conv2"], (1, 1), "VALID",
        dimension_numbers=("NCHW", "OIHW", "NCHW"))
    hs = hs + params["b_conv2"][None, :, None, None]
    hs = jnp.max(hs, axis=(2, 3))
    hc = jax.nn.relu(scalar @ params["w_fc1"].T + params["b_fc1"])
    hc = jax.nn.relu(hc @ params["w_fc2"].T + params["b_fc2"])
    h = jnp.concatenate([hs, hc], axis=-1)
    h = jax.nn.relu(h @ params["w_fc3"].T + params["b_fc3"])
    v = h @ params["w_fcv"].T + params["b_fcv"]
    a = jax.nn.softmax(h @ params["w_fca"].T + params["b_fca"], axis=-1)
    return a, v


if __name__ == "__main__":
    # config: spatial_dim (input channels) = 4, scalar_dim = 32, action_dim = 8
    B, CIN, H, W = 2, 4, 16, 16
    SCALAR_DIM, ACTION_DIM = 32, 8

    key = jax.random.PRNGKey(0)
    k_params, k_sp, k_sc = jax.random.split(key, 3)
    params = init_params(k_params, CIN, SCALAR_DIM, ACTION_DIM)

    spatial_nchw = jax.random.normal(k_sp, (B, CIN, H, W), jnp.float32)  # torch layout
    spatial_nhwc = jnp.transpose(spatial_nchw, (0, 2, 3, 1))             # kernel layout
    scalar = jax.random.normal(k_sc, (B, SCALAR_DIM), jnp.float32)

    packed = pack_weights(params)
    a, v = model_forward(packed, spatial_nhwc, scalar, action_dim=ACTION_DIM)
    jax.block_until_ready((a, v))

    a_ref, v_ref = reference_forward(params, spatial_nhwc, scalar)
    assert a.shape == (B, ACTION_DIM) and v.shape == (B, 1)
    # approx reciprocal in-kernel softmax -> slightly loose sum check
    assert jnp.allclose(jnp.sum(a, axis=-1), 1.0, atol=2e-3)
    # bf16 conv-path operands (f32 accumulation) -> ~1e-3 level deltas
    assert jnp.allclose(a, a_ref, atol=1e-2, rtol=1e-2)
    assert jnp.allclose(v, v_ref, atol=1e-2, rtol=1e-2)

    print("KERNEL_OK")
</pallas_src>

<mosaic_0001>
module attributes {stable_mosaic.version = 11 : i64} {
  func.func @fused_model_kernel(%arg0: i32, %arg1: memref<80x128xbf16, #tpu.memory_space<vmem>>, %arg2: memref<128x32xbf16, #tpu.memory_space<vmem>>, %arg3: memref<1x32xf32, #tpu.memory_space<vmem>>, %arg4: memref<288x64xf32, #tpu.memory_space<vmem>>, %arg5: memref<1x64xf32, #tpu.memory_space<vmem>>, %arg6: memref<40x64xf32, #tpu.memory_space<vmem>>, %arg7: memref<2x32xf32, #tpu.memory_space<vmem>>, %arg8: memref<32x64xf32, #tpu.memory_space<vmem>>, %arg9: memref<1x64xf32, #tpu.memory_space<vmem>>, %arg10: memref<64x64xf32, #tpu.memory_space<vmem>>, %arg11: memref<1x64xf32, #tpu.memory_space<vmem>>, %arg12: memref<64x128xf32, #tpu.memory_space<vmem>>, %arg13: memref<64x128xf32, #tpu.memory_space<vmem>>, %arg14: memref<1x128xf32, #tpu.memory_space<vmem>>, %arg15: memref<128x128xf32, #tpu.memory_space<vmem>>, %arg16: memref<1x128xf32, #tpu.memory_space<vmem>>, %arg17: memref<2x128xf32, #tpu.memory_space<vmem>>, %arg18: memref<96x32xf32, #tpu.memory_space<vmem>>) attributes {dimension_semantics = [#tpu.dimension_semantics<parallel>], iteration_bounds = array<i64: 1>, scalar_prefetch = 0 : i64, scratch_operands = 1 : i64, tpu.core_type = #tpu.core_type<tc>, window_params = [{transform_indices = @transform_0, window_bounds = array<i64: 80, 128>}, {pipeline_mode = #tpu.pipeline_mode<synchronous>, transform_indices = @transform_1, window_bounds = array<i64: 128, 32>}, {pipeline_mode = #tpu.pipeline_mode<synchronous>, transform_indices = @transform_2, window_bounds = array<i64: 1, 32>}, {pipeline_mode = #tpu.pipeline_mode<synchronous>, transform_indices = @transform_3, window_bounds = array<i64: 288, 64>}, {pipeline_mode = #tpu.pipeline_mode<synchronous>, transform_indices = @transform_4, window_bounds = array<i64: 1, 64>}, {pipeline_mode = #tpu.pipeline_mode<synchronous>, transform_indices = @transform_5, window_bounds = array<i64: 40, 64>}, {transform_indices = @transform_6, window_bounds = array<i64: 2, 32>}, {pipeline_mode = #tpu.pipeline_mode<synchronous>, transform_indices = @transform_7, window_bounds = array<i64: 32, 64>}, {pipeline_mode = #tpu.pipeline_mode<synchronous>, transform_indices = @transform_8, window_bounds = array<i64: 1, 64>}, {pipeline_mode = #tpu.pipeline_mode<synchronous>, transform_indices = @transform_9, window_bounds = array<i64: 64, 64>}, {pipeline_mode = #tpu.pipeline_mode<synchronous>, transform_indices = @transform_10, window_bounds = array<i64: 1, 64>}, {pipeline_mode = #tpu.pipeline_mode<synchronous>, transform_indices = @transform_11, window_bounds = array<i64: 64, 128>}, {pipeline_mode = #tpu.pipeline_mode<synchronous>, transform_indices = @transform_12, window_bounds = array<i64: 64, 128>}, {pipeline_mode = #tpu.pipeline_mode<synchronous>, transform_indices = @transform_13, window_bounds = array<i64: 1, 128>}, {pipeline_mode = #tpu.pipeline_mode<synchronous>, transform_indices = @transform_14, window_bounds = array<i64: 128, 128>}, {pipeline_mode = #tpu.pipeline_mode<synchronous>, transform_indices = @transform_15, window_bounds = array<i64: 1, 128>}, {transform_indices = @transform_16, window_bounds = array<i64: 2, 128>}]} {
    %c0 = arith.constant 0 : index
    %c0_0 = arith.constant 0 : index
    %0 = vector.load %arg1[%c0, %c0_0] : memref<80x128xbf16, #tpu.memory_space<vmem>>, vector<80x128xbf16>
    %c0_1 = arith.constant 0 : index
    %c0_2 = arith.constant 0 : index
    %1 = vector.load %arg2[%c0_1, %c0_2] : memref<128x32xbf16, #tpu.memory_space<vmem>>, vector<128x32xbf16>
    %cst = arith.constant dense<0.000000e+00> : vector<80x32xf32>
    %2 = tpu.matmul %0, %1, %cst {dimension_numbers = #tpu.dot_dimension_numbers<[1], [0], [0], [1], [0, 0, 1, 1], [], []>} : vector<80x128xbf16>, vector<128x32xbf16>, vector<80x32xf32> -> vector<80x32xf32>
    %c0_3 = arith.constant 0 : index
    %c0_4 = arith.constant 0 : index
    %3 = vector.load %arg3[%c0_3, %c0_4] : memref<1x32xf32, #tpu.memory_space<vmem>>, vector<1x32xf32>
    %4 = vector.broadcast %3 : vector<1x32xf32> to vector<80x32xf32>
    %5 = arith.addf %2, %4 : vector<80x32xf32>
    %cst_5 = arith.constant 0.000000e+00 : f32
    %6 = vector.broadcast %cst_5 : f32 to vector<80x32xf32>
    %7 = arith.maximumf %5, %6 : vector<80x32xf32>
    %c0_6 = arith.constant 0 : index
    %c0_7 = arith.constant 0 : index
    %8 = vector.load %arg18[%c0_6, %c0_7] : memref<96x32xf32, #tpu.memory_space<vmem>>, vector<80x32xf32>
    tpu.vector_store %arg18[%c0_6, %c0_7], %7 {strides = array<i32>} : memref<96x32xf32, #tpu.memory_space<vmem>>, vector<80x32xf32>,
    %cst_8 = arith.constant 0.000000e+00 : f32
    %9 = vector.broadcast %cst_8 : f32 to vector<16x32xf32>
    %c80 = arith.constant 80 : index
    %c0_9 = arith.constant 0 : index
    %10 = vector.load %arg18[%c80, %c0_9] : memref<96x32xf32, #tpu.memory_space<vmem>>, vector<16x32xf32>
    tpu.vector_store %arg18[%c80, %c0_9], %9 {strides = array<i32>} : memref<96x32xf32, #tpu.memory_space<vmem>>, vector<16x32xf32>,
    %cst_10 = arith.constant 0.000000e+00 : f32
    %11 = vector.broadcast %cst_10 : f32 to vector<80x64xf32>
    %c0_11 = arith.constant 0 : index
    %c0_12 = arith.constant 0 : index
    %12 = vector.load %arg18[%c0_11, %c0_12] : memref<96x32xf32, #tpu.memory_space<vmem>>, vector<80x32xf32>
    %c0_13 = arith.constant 0 : index
    %c0_14 = arith.constant 0 : index
    %13 = vector.load %arg4[%c0_13, %c0_14] : memref<288x64xf32, #tpu.memory_space<vmem>>, vector<32x64xf32>
    %cst_15 = arith.constant dense<0.000000e+00> : vector<80x64xf32>
    %14 = tpu.matmul %12, %13, %cst_15 {dimension_numbers = #tpu.dot_dimension_numbers<[1], [0], [0], [1], [0, 0, 1, 1], [], []>} : vector<80x32xf32>, vector<32x64xf32>, vector<80x64xf32> -> vector<80x64xf32>
    %15 = arith.addf %11, %14 : vector<80x64xf32>
    %c1 = arith.constant 1 : index
    %c0_16 = arith.constant 0 : index
    %16 = vector.load %arg18[%c1, %c0_16] : memref<96x32xf32, #tpu.memory_space<vmem>>, vector<80x32xf32>
    %c32 = arith.constant 32 : index
    %c0_17 = arith.constant 0 : index
    %17 = vector.load %arg4[%c32, %c0_17] : memref<288x64xf32, #tpu.memory_space<vmem>>, vector<32x64xf32>
    %cst_18 = arith.constant dense<0.000000e+00> : vector<80x64xf32>
    %18 = tpu.matmul %16, %17, %cst_18 {dimension_numbers = #tpu.dot_dimension_numbers<[1], [0], [0], [1], [0, 0, 1, 1], [], []>} : vector<80x32xf32>, vector<32x64xf32>, vector<80x64xf32> -> vector<80x64xf32>
    %19 = arith.addf %15, %18 : vector<80x64xf32>
    %c2 = arith.constant 2 : index
    %c0_19 = arith.constant 0 : index
    %20 = vector.load %arg18[%c2, %c0_19] : memref<96x32xf32, #tpu.memory_space<vmem>>, vector<80x32xf32>
    %c64 = arith.constant 64 : index
    %c0_20 = arith.constant 0 : index
    %21 = vector.load %arg4[%c64, %c0_20] : memref<288x64xf32, #tpu.memory_space<vmem>>, vector<32x64xf32>
    %cst_21 = arith.constant dense<0.000000e+00> : vector<80x64xf32>
    %22 = tpu.matmul %20, %21, %cst_21 {dimension_numbers = #tpu.dot_dimension_numbers<[1], [0], [0], [1], [0, 0, 1, 1], [], []>} : vector<80x32xf32>, vector<32x64xf32>, vector<80x64xf32> -> vector<80x64xf32>
    %23 = arith.addf %19, %22 : vector<80x64xf32>
    %c6 = arith.constant 6 : index
    %c0_22 = arith.constant 0 : index
    %24 = vector.load %arg18[%c6, %c0_22] : memref<96x32xf32, #tpu.memory_space<vmem>>, vector<80x32xf32>
    %c96 = arith.constant 96 : index
    %c0_23 = arith.constant 0 : index
    %25 = vector.load %arg4[%c96, %c0_23] : memref<288x64xf32, #tpu.memory_space<vmem>>, vector<32x64xf32>
    %cst_24 = arith.constant dense<0.000000e+00> : vector<80x64xf32>
    %26 = tpu.matmul %24, %25, %cst_24 {dimension_numbers = #tpu.dot_dimension_numbers<[1], [0], [0], [1], [0, 0, 1, 1], [], []>} : vector<80x32xf32>, vector<32x64xf32>, vector<80x64xf32> -> vector<80x64xf32>
    %27 = arith.addf %23, %26 : vector<80x64xf32>
    %c7 = arith.constant 7 : index
    %c0_25 = arith.constant 0 : index
    %28 = vector.load %arg18[%c7, %c0_25] : memref<96x32xf32, #tpu.memory_space<vmem>>, vector<80x32xf32>
    %c128 = arith.constant 128 : index
    %c0_26 = arith.constant 0 : index
    %29 = vector.load %arg4[%c128, %c0_26] : memref<288x64xf32, #tpu.memory_space<vmem>>, vector<32x64xf32>
    %cst_27 = arith.constant dense<0.000000e+00> : vector<80x64xf32>
    %30 = tpu.matmul %28, %29, %cst_27 {dimension_numbers = #tpu.dot_dimension_numbers<[1], [0], [0], [1], [0, 0, 1, 1], [], []>} : vector<80x32xf32>, vector<32x64xf32>, vector<80x64xf32> -> vector<80x64xf32>
    %31 = arith.addf %27, %30 : vector<80x64xf32>
    %c8 = arith.constant 8 : index
    %c0_28 = arith.constant 0 : index
    %32 = vector.load %arg18[%c8, %c0_28] : memref<96x32xf32, #tpu.memory_space<vmem>>, vector<80x32xf32>
    %c160 = arith.constant 160 : index
    %c0_29 = arith.constant 0 : index
    %33 = vector.load %arg4[%c160, %c0_29] : memref<288x64xf32, #tpu.memory_space<vmem>>, vector<32x64xf32>
    %cst_30 = arith.constant dense<0.000000e+00> : vector<80x64xf32>
    %34 = tpu.matmul %32, %33, %cst_30 {dimension_numbers = #tpu.dot_dimension_numbers<[1], [0], [0], [1], [0, 0, 1, 1], [], []>} : vector<80x32xf32>, vector<32x64xf32>, vector<80x64xf32> -> vector<80x64xf32>
    %35 = arith.addf %31, %34 : vector<80x64xf32>
    %c12 = arith.constant 12 : index
    %c0_31 = arith.constant 0 : index
    %36 = vector.load %arg18[%c12, %c0_31] : memref<96x32xf32, #tpu.memory_space<vmem>>, vector<80x32xf32>
    %c192 = arith.constant 192 : index
    %c0_32 = arith.constant 0 : index
    %37 = vector.load %arg4[%c192, %c0_32] : memref<288x64xf32, #tpu.memory_space<vmem>>, vector<32x64xf32>
    %cst_33 = arith.constant dense<0.000000e+00> : vector<80x64xf32>
    %38 = tpu.matmul %36, %37, %cst_33 {dimension_numbers = #tpu.dot_dimension_numbers<[1], [0], [0], [1], [0, 0, 1, 1], [], []>} : vector<80x32xf32>, vector<32x64xf32>, vector<80x64xf32> -> vector<80x64xf32>
    %39 = arith.addf %35, %38 : vector<80x64xf32>
    %c13 = arith.constant 13 : index
    %c0_34 = arith.constant 0 : index
    %40 = vector.load %arg18[%c13, %c0_34] : memref<96x32xf32, #tpu.memory_space<vmem>>, vector<80x32xf32>
    %c224 = arith.constant 224 : index
    %c0_35 = arith.constant 0 : index
    %41 = vector.load %arg4[%c224, %c0_35] : memref<288x64xf32, #tpu.memory_space<vmem>>, vector<32x64xf32>
    %cst_36 = arith.constant dense<0.000000e+00> : vector<80x64xf32>
    %42 = tpu.matmul %40, %41, %cst_36 {dimension_numbers = #tpu.dot_dimension_numbers<[1], [0], [0], [1], [0, 0, 1, 1], [], []>} : vector<80x32xf32>, vector<32x64xf32>, vector<80x64xf32> -> vector<80x64xf32>
    %43 = arith.addf %39, %42 : vector<80x64xf32>
    %c14 = arith.constant 14 : index
    %c0_37 = arith.constant 0 : index
    %44 = vector.load %arg18[%c14, %c0_37] : memref<96x32xf32, #tpu.memory_space<vmem>>, vector<80x32xf32>
    %c256 = arith.constant 256 : index
    %c0_38 = arith.constant 0 : index
    %45 = vector.load %arg4[%c256, %c0_38] : memref<288x64xf32, #tpu.memory_space<vmem>>, vector<32x64xf32>
    %cst_39 = arith.constant dense<0.000000e+00> : vector<80x64xf32>
    %46 = tpu.matmul %44, %45, %cst_39 {dimension_numbers = #tpu.dot_dimension_numbers<[1], [0], [0], [1], [0, 0, 1, 1], [], []>} : vector<80x32xf32>, vector<32x64xf32>, vector<80x64xf32> -> vector<80x64xf32>
    %47 = arith.addf %43, %46 : vector<80x64xf32>
    %c0_40 = arith.constant 0 : index
    %c0_41 = arith.constant 0 : index
    %48 = vector.load %arg5[%c0_40, %c0_41] : memref<1x64xf32, #tpu.memory_space<vmem>>, vector<1x64xf32>
    %49 = vector.broadcast %48 : vector<1x64xf32> to vector<80x64xf32>
    %50 = arith.addf %47, %49 : vector<80x64xf32>
    %51 = vector.shape_cast %50 : vector<80x64xf32> to vector<2x40x64xf32>
    %c0_42 = arith.constant 0 : index
    %c0_43 = arith.constant 0 : index
    %52 = vector.load %arg6[%c0_42, %c0_43] : memref<40x64xf32, #tpu.memory_space<vmem>>, vector<40x64xf32>
    %53 = vector.shape_cast %52 : vector<40x64xf32> to vector<1x40x64xf32>
    %54 = vector.broadcast %53 : vector<1x40x64xf32> to vector<2x40x64xf32>
    %55 = arith.addf %51, %54 : vector<2x40x64xf32>
    %cst_44 = arith.constant dense<0xFF800000> : vector<2x64xf32>
    %56 = vector.multi_reduction <maximumf>, %55, %cst_44 [1] : vector<2x40x64xf32> to vector<2x64xf32>
    %c0_45 = arith.constant 0 : index
    %c0_46 = arith.constant 0 : index
    %57 = vector.load %arg7[%c0_45, %c0_46] : memref<2x32xf32, #tpu.memory_space<vmem>>, vector<2x32xf32>
    %c0_47 = arith.constant 0 : index
    %c0_48 = arith.constant 0 : index
    %58 = vector.load %arg8[%c0_47, %c0_48] : memref<32x64xf32, #tpu.memory_space<vmem>>, vector<32x64xf32>
    %cst_49 = arith.constant dense<0.000000e+00> : vector<2x64xf32>
    %59 = tpu.matmul %57, %58, %cst_49 {dimension_numbers = #tpu.dot_dimension_numbers<[1], [0], [0], [1], [0, 0, 1, 1], [], []>} : vector<2x32xf32>, vector<32x64xf32>, vector<2x64xf32> -> vector<2x64xf32>
    %c0_50 = arith.constant 0 : index
    %c0_51 = arith.constant 0 : index
    %60 = vector.load %arg9[%c0_50, %c0_51] : memref<1x64xf32, #tpu.memory_space<vmem>>, vector<1x64xf32>
    %61 = vector.broadcast %60 : vector<1x64xf32> to vector<2x64xf32>
    %62 = arith.addf %59, %61 : vector<2x64xf32>
    %cst_52 = arith.constant 0.000000e+00 : f32
    %63 = vector.broadcast %cst_52 : f32 to vector<2x64xf32>
    %64 = arith.maximumf %62, %63 : vector<2x64xf32>
    %c0_53 = arith.constant 0 : index
    %c0_54 = arith.constant 0 : index
    %65 = vector.load %arg10[%c0_53, %c0_54] : memref<64x64xf32, #tpu.memory_space<vmem>>, vector<64x64xf32>
    %cst_55 = arith.constant dense<0.000000e+00> : vector<2x64xf32>
    %66 = tpu.matmul %64, %65, %cst_55 {dimension_numbers = #tpu.dot_dimension_numbers<[1], [0], [0], [1], [0, 0, 1, 1], [], []>} : vector<2x64xf32>, vector<64x64xf32>, vector<2x64xf32> -> vector<2x64xf32>
    %c0_56 = arith.constant 0 : index
    %c0_57 = arith.constant 0 : index
    %67 = vector.load %arg11[%c0_56, %c0_57] : memref<1x64xf32, #tpu.memory_space<vmem>>, vector<1x64xf32>
    %68 = vector.broadcast %67 : vector<1x64xf32> to vector<2x64xf32>
    %69 = arith.addf %66, %68 : vector<2x64xf32>
    %cst_58 = arith.constant 0.000000e+00 : f32
    %70 = vector.broadcast %cst_58 : f32 to vector<2x64xf32>
    %71 = arith.maximumf %69, %70 : vector<2x64xf32>
    %c0_59 = arith.constant 0 : index
    %c0_60 = arith.constant 0 : index
    %72 = vector.load %arg12[%c0_59, %c0_60] : memref<64x128xf32, #tpu.memory_space<vmem>>, vector<64x128xf32>
    %cst_61 = arith.constant dense<0.000000e+00> : vector<2x128xf32>
    %73 = tpu.matmul %56, %72, %cst_61 {dimension_numbers = #tpu.dot_dimension_numbers<[1], [0], [0], [1], [0, 0, 1, 1], [], []>} : vector<2x64xf32>, vector<64x128xf32>, vector<2x128xf32> -> vector<2x128xf32>
    %c0_62 = arith.constant 0 : index
    %c0_63 = arith.constant 0 : index
    %74 = vector.load %arg13[%c0_62, %c0_63] : memref<64x128xf32, #tpu.memory_space<vmem>>, vector<64x128xf32>
    %cst_64 = arith.constant dense<0.000000e+00> : vector<2x128xf32>
    %75 = tpu.matmul %71, %74, %cst_64 {dimension_numbers = #tpu.dot_dimension_numbers<[1], [0], [0], [1], [0, 0, 1, 1], [], []>} : vector<2x64xf32>, vector<64x128xf32>, vector<2x128xf32> -> vector<2x128xf32>
    %76 = arith.addf %73, %75 : vector<2x128xf32>
    %c0_65 = arith.constant 0 : index
    %c0_66 = arith.constant 0 : index
    %77 = vector.load %arg14[%c0_65, %c0_66] : memref<1x128xf32, #tpu.memory_space<vmem>>, vector<1x128xf32>
    %78 = vector.broadcast %77 : vector<1x128xf32> to vector<2x128xf32>
    %79 = arith.addf %76, %78 : vector<2x128xf32>
    %cst_67 = arith.constant 0.000000e+00 : f32
    %80 = vector.broadcast %cst_67 : f32 to vector<2x128xf32>
    %81 = arith.maximumf %79, %80 : vector<2x128xf32>
    %c0_68 = arith.constant 0 : index
    %c0_69 = arith.constant 0 : index
    %82 = vector.load %arg15[%c0_68, %c0_69] : memref<128x128xf32, #tpu.memory_space<vmem>>, vector<128x128xf32>
    %cst_70 = arith.constant dense<0.000000e+00> : vector<2x128xf32>
    %83 = tpu.matmul %81, %82, %cst_70 {dimension_numbers = #tpu.dot_dimension_numbers<[1], [0], [0], [1], [0, 0, 1, 1], [], []>} : vector<2x128xf32>, vector<128x128xf32>, vector<2x128xf32> -> vector<2x128xf32>
    %c0_71 = arith.constant 0 : index
    %c0_72 = arith.constant 0 : index
    %84 = vector.load %arg16[%c0_71, %c0_72] : memref<1x128xf32, #tpu.memory_space<vmem>>, vector<1x128xf32>
    %85 = vector.broadcast %84 : vector<1x128xf32> to vector<2x128xf32>
    %86 = arith.addf %83, %85 : vector<2x128xf32>
    %87 = tpu.iota {dimensions = array<i32: 1>} : vector<2x128xi32>
    %c8_i32 = arith.constant 8 : i32
    %88 = vector.broadcast %c8_i32 : i32 to vector<2x128xi32>
    %89 = arith.cmpi slt, %87, %88 : vector<2x128xi32>
    %cst_73 = arith.constant -1.000000e+30 : f32
    %90 = vector.broadcast %cst_73 : f32 to vector<2x128xf32>
    %91 = arith.select %89, %86, %90 : vector<2x128xi1>, vector<2x128xf32>
    %cst_74 = arith.constant dense<0xFF800000> : vector<2xf32>
    %92 = vector.multi_reduction <maximumf>, %91, %cst_74 [1] : vector<2x128xf32> to vector<2xf32>
    %93 = vector.shape_cast %92 : vector<2xf32> to vector<2x1xf32>
    %94 = vector.broadcast %93 : vector<2x1xf32> to vector<2x128xf32>
    %95 = arith.subf %91, %94 : vector<2x128xf32>
    %96 = math.exp %95 : vector<2x128xf32>
    %cst_75 = arith.constant dense<0.000000e+00> : vector<2xf32>
    %97 = vector.multi_reduction <add>, %96, %cst_75 [1] : vector<2x128xf32> to vector<2xf32>
    %98 = vector.shape_cast %97 : vector<2xf32> to vector<2x1xf32>
    %99 = tpu.reciprocal %98 {approx = true} : vector<2x1xf32> -> vector<2x1xf32>
    %100 = vector.broadcast %99 : vector<2x1xf32> to vector<2x128xf32>
    %101 = arith.mulf %96, %100 : vector<2x128xf32>
    %c8_i32_76 = arith.constant 8 : i32
    %102 = vector.broadcast %c8_i32_76 : i32 to vector<2x128xi32>
    %103 = arith.cmpi eq, %87, %102 : vector<2x128xi32>
    %104 = arith.select %103, %86, %101 : vector<2x128xi1>, vector<2x128xf32>
    %c0_77 = arith.constant 0 : index
    %c0_78 = arith.constant 0 : index
    %105 = vector.load %arg17[%c0_77, %c0_78] : memref<2x128xf32, #tpu.memory_space<vmem>>, vector<2x128xf32>
    tpu.vector_store %arg17[%c0_77, %c0_78], %104 {strides = array<i32>} : memref<2x128xf32, #tpu.memory_space<vmem>>, vector<2x128xf32>,
    return
  }
  func.func @transform_0(%arg0: i32) -> (i32, i32) {
    %c0_i32 = arith.constant 0 : i32
    %c0_i32_0 = arith.constant 0 : i32
    return %arg0, %c0_i32 : i32, i32
  }
  func.func @transform_1(%arg0: i32) -> (i32, i32) {
    %c0_i32 = arith.constant 0 : i32
    %c0_i32_0 = arith.constant 0 : i32
    %c0_i32_1 = arith.constant 0 : i32
    return %c0_i32, %c0_i32_0 : i32, i32
  }
  func.func @transform_2(%arg0: i32) -> (i32, i32) {
    %c0_i32 = arith.constant 0 : i32
    %c0_i32_0 = arith.constant 0 : i32
    %c0_i32_1 = arith.constant 0 : i32
    return %c0_i32, %c0_i32_0 : i32, i32
  }
  func.func @transform_3(%arg0: i32) -> (i32, i32) {
    %c0_i32 = arith.constant 0 : i32
    %c0_i32_0 = arith.constant 0 : i32
    %c0_i32_1 = arith.constant 0 : i32
    return %c0_i32, %c0_i32_0 : i32, i32
  }
  func.func @transform_4(%arg0: i32) -> (i32, i32) {
    %c0_i32 = arith.constant 0 : i32
    %c0_i32_0 = arith.constant 0 : i32
    %c0_i32_1 = arith.constant 0 : i32
    return %c0_i32, %c0_i32_0 : i32, i32
  }
  func.func @transform_5(%arg0: i32) -> (i32, i32) {
    %c0_i32 = arith.constant 0 : i32
    %c0_i32_0 = arith.constant 0 : i32
    %c0_i32_1 = arith.constant 0 : i32
    return %c0_i32, %c0_i32_0 : i32, i32
  }
  func.func @transform_6(%arg0: i32) -> (i32, i32) {
    %c0_i32 = arith.constant 0 : i32
    %c0_i32_0 = arith.constant 0 : i32
    return %arg0, %c0_i32 : i32, i32
  }
  func.func @transform_7(%arg0: i32) -> (i32, i32) {
    %c0_i32 = arith.constant 0 : i32
    %c0_i32_0 = arith.constant 0 : i32
    %c0_i32_1 = arith.constant 0 : i32
    return %c0_i32, %c0_i32_0 : i32, i32
  }
  func.func @transform_8(%arg0: i32) -> (i32, i32) {
    %c0_i32 = arith.constant 0 : i32
    %c0_i32_0 = arith.constant 0 : i32
    %c0_i32_1 = arith.constant 0 : i32
    return %c0_i32, %c0_i32_0 : i32, i32
  }
  func.func @transform_9(%arg0: i32) -> (i32, i32) {
    %c0_i32 = arith.constant 0 : i32
    %c0_i32_0 = arith.constant 0 : i32
    %c0_i32_1 = arith.constant 0 : i32
    return %c0_i32, %c0_i32_0 : i32, i32
  }
  func.func @transform_10(%arg0: i32) -> (i32, i32) {
    %c0_i32 = arith.constant 0 : i32
    %c0_i32_0 = arith.constant 0 : i32
    %c0_i32_1 = arith.constant 0 : i32
    return %c0_i32, %c0_i32_0 : i32, i32
  }
  func.func @transform_11(%arg0: i32) -> (i32, i32) {
    %c0_i32 = arith.constant 0 : i32
    %c0_i32_0 = arith.constant 0 : i32
    %c0_i32_1 = arith.constant 0 : i32
    return %c0_i32, %c0_i32_0 : i32, i32
  }
  func.func @transform_12(%arg0: i32) -> (i32, i32) {
    %c0_i32 = arith.constant 0 : i32
    %c0_i32_0 = arith.constant 0 : i32
    %c0_i32_1 = arith.constant 0 : i32
    return %c0_i32, %c0_i32_0 : i32, i32
  }
  func.func @transform_13(%arg0: i32) -> (i32, i32) {
    %c0_i32 = arith.constant 0 : i32
    %c0_i32_0 = arith.constant 0 : i32
    %c0_i32_1 = arith.constant 0 : i32
    return %c0_i32, %c0_i32_0 : i32, i32
  }
  func.func @transform_14(%arg0: i32) -> (i32, i32) {
    %c0_i32 = arith.constant 0 : i32
    %c0_i32_0 = arith.constant 0 : i32
    %c0_i32_1 = arith.constant 0 : i32
    return %c0_i32, %c0_i32_0 : i32, i32
  }
  func.func @transform_15(%arg0: i32) -> (i32, i32) {
    %c0_i32 = arith.constant 0 : i32
    %c0_i32_0 = arith.constant 0 : i32
    %c0_i32_1 = arith.constant 0 : i32
    return %c0_i32, %c0_i32_0 : i32, i32
  }
  func.func @transform_16(%arg0: i32) -> (i32, i32) {
    %c0_i32 = arith.constant 0 : i32
    %c0_i32_0 = arith.constant 0 : i32
    return %arg0, %c0_i32 : i32, i32
  }
}

</mosaic_0001>

<bundles_post_ra>
// kernel: model_forward.1
= control target key start
LH: loop header
LB: loop body
LE: loop exit
PB: predicated region body
PF: predicated region fallthrough
CT: control target
= control target key end

     0   :  { %v3179_v0 = vmov 0.0   ;;  %vm3180_vm0 = vmmov 0   ;;  %vm248_vm1 = vcmask 261120   ;;  %v3181_v26 = vmov 0.0|0.0   ;;  %s3859_s1 = inlined_call_operand.vmem [shape: bf16[128,32], index: 1, kind: input, shape index: {}]   ;;  %s3860_s0 = inlined_call_operand.vmem [shape: bf16[80,128], index: 0, kind: input, shape index: {}]   ;;  %s3861_s3 = inlined_call_operand.vmem [shape: f32[288,64], index: 3, kind: input, shape index: {}]   ;;  %s3862_s2 = inlined_call_operand.vmem [shape: f32[1,32], index: 2, kind: input, shape index: {}]   ;;  %s3863_s7 = inlined_call_operand.vmem [shape: f32[32,64], index: 7, kind: input, shape index: {}]   ;;  %s3864_s6 = inlined_call_operand.vmem [shape: f32[2,32], index: 6, kind: input, shape index: {}]   ;;  %s3865_s9 = inlined_call_operand.vmem [shape: f32[64,64], index: 9, kind: input, shape index: {}]   ;;  %s3866_s8 = inlined_call_operand.vmem [shape: f32[1,64], index: 8, kind: input, shape index: {}]   ;;  %s3867_s12 = inlined_call_operand.vmem [shape: f32[64,128], index: 12, kind: input, shape index: {}]   ;;  %s3868_s4 = inlined_call_operand.vmem [shape: f32[1,64], index: 4, kind: input, shape index: {}]   ;;  %s3869_s5 = inlined_call_operand.vmem [shape: f32[40,64], index: 5, kind: input, shape index: {}]   ;;  %s3870_s10 = inlined_call_operand.vmem [shape: f32[1,64], index: 10, kind: input, shape index: {}]   ;;  %s3871_s11 = inlined_call_operand.vmem [shape: f32[64,128], index: 11, kind: input, shape index: {}]   ;;  %s3872_s14 = inlined_call_operand.vmem [shape: f32[128,128], index: 14, kind: input, shape index: {}]   ;;  %s3873_s13 = inlined_call_operand.vmem [shape: f32[1,128], index: 13, kind: input, shape index: {}]   ;;  %s3874_s15 = inlined_call_operand.vmem [shape: f32[1,128], index: 15, kind: input, shape index: {}]   ;;  %s3875_s16 = inlined_call_operand.vmem [shape: f32[2,128], index: 16, kind: output, shape index: {}]  }
   0x1   :  { %3877 = sst [smem:[#allocation3_spill]] %s3859_s1  ;;  %2591 = vmatprep.subr.bf16.mxu0 %v3179_v0  ;;  %2607 = vmatprep.mubr.msk.bf16.mxu0 %vm3180_vm0, %v3179_v0  ;;  %v1603_v8 = vld [vmem:[%s3861_s3 + $0x100] sm:$0xff]  ;;  %v1604_v9 = vld [vmem:[%s3861_s3 + $0x108] sm:$0xff]  ;;  %v3172_v14 = vld [vmem:[%s3860_s0 + $0x10] sm:$0xff]   ;;  %259 = vst.msk [vmem:[#allocation2 + $0x50] sm:$0xff] %vm248_vm1, %v3179_v0  ;;  %vm1794_vm2 = vcmask 523264  }
   0x2   :  { %s3878_s23 = sld [smem:[#allocation3_spill]]  ;;  %v3307_v11 = vpack.c.bf16 %v1604_v9, %v1603_v8  ;;  %v3170_v12 = vld [vmem:[%s3860_s0] sm:$0xff]   ;;  %v3171_v13 = vld [vmem:[%s3860_s0 + $0x8] sm:$0xff]   ;;  %v3173_v15 = vld [vmem:[%s3860_s0 + $0x18] sm:$0xff]   ;;  %260 = vst.msk [vmem:[#allocation2 + $0x58] sm:$0xff] %vm248_vm1, %v3179_v0  ;;  %vm2091_vm3 = vcmask 1041409  }
   0x3   :  { %v3174_v16 = vld [vmem:[%s3860_s0 + $0x20] sm:$0xff]   ;;  %v286_v18 = vld [vmem:[%s3861_s3 + $0x28] sm:$0xff]  ;;  %v287_v20 = vld [vmem:[%s3861_s3 + $0x30] sm:$0xff]  ;;  %vm2271_vm5 = vcmask 1041408  }
   0x4   :  { %v285_v17 = vld [vmem:[%s3861_s3 + $0x20] sm:$0xff]  ;;  %v288_v21 = vld [vmem:[%s3861_s3 + $0x38] sm:$0xff]  ;;  %v1605_v22 = vld [vmem:[%s3861_s3 + $0x110] sm:$0xff] }
   0x5   :  { %v2937_v19 = vpack.c.bf16 %v286_v18, %v285_v17  ;;  %v1606_v23 = vld [vmem:[%s3861_s3 + $0x118] sm:$0xff]  ;;  %v2941_v24 = vpack.c.bf16 %v288_v21, %v287_v20  ;;  %v271_v27 = vld [vmem:[%s3861_s3] sm:$0xff]  ;;  %v272_v28 = vld [vmem:[%s3861_s3 + $0x8] sm:$0xff] }
   0x6   :  { %v3356_v25 = vpack.c.bf16 %v1606_v23, %v1605_v22  ;;  %v2945_v29 = vpack.c.bf16 %v272_v28, %v271_v27  ;;  %v3370_v30 = vld [vmem:[%s3862_s2] ss:$0 sm:$0xff]  ;;  %v1827_v52 = vld [vmem:[%s3863_s7 + $0x8] sm:$0xff]  ;;  %v273_v53 = vld [vmem:[%s3861_s3 + $0x10] sm:$0xff] }
   0x7   :  { %2938 = vmatprep.subr.bf16.mxu1 %v2937_v19  ;;  %v1826_v49 = vld [vmem:[%s3863_s7] sm:$0xff]  ;;  %v274_v54 = vld [vmem:[%s3861_s3 + $0x18] sm:$0xff] }
   0x8   :  { %v3162_v1 = vld [vmem:[%s3878_s23] sm:$0xff]   ;;  %v3163_v2 = vld [vmem:[%s3878_s23 + $0x8] sm:$0xff]   ;;  %v3164_v3 = vld [vmem:[%s3878_s23 + $0x10] sm:$0xff]   ;;  %2940 = vmatpush3.bf16.msra.mxu1 %v2937_v19  ;;  %v3010_v62 = vpack.c.bf16 %v1827_v52, %v1826_v49  ;;  %v2949_v63 = vpack.c.bf16 %v274_v54, %v273_v53 }
   0x9   :  { %2592 = vmatpush3.bf16.msra.mxu0 %v3162_v1  ;;  %v3165_v4 = vld [vmem:[%s3878_s23 + $0x18] sm:$0xff]   ;;  %v3166_v5 = vld [vmem:[%s3878_s23 + $0x20] sm:$0xff]   ;;  %v3167_v6 = vld [vmem:[%s3878_s23 + $0x28] sm:$0xff]   ;;  %2942 = vmatprep.subr.bf16.mxu1 %v2941_v24 }
   0xa   :  { %2593 = vmatprep.subr.bf16.mxu0 %v3179_v0  ;;  %v3168_v7 = vld [vmem:[%s3878_s23 + $0x30] sm:$0xff]   ;;  %v3169_v10 = vld [vmem:[%s3878_s23 + $0x38] sm:$0xff]   ;;  %v589_v59 = vld [vmem:[%s3861_s3 + $0x40] sm:$0xff] }
   0xb   :  { %v590_v1 = vld [vmem:[%s3861_s3 + $0x48] sm:$0xff] }
   0xc   :  { %2944 = vmatpush3.bf16.msra.mxu1 %v2941_v24 }
   0xd   :  { %2594 = vmatpush3.bf16.msra.mxu0 %v3163_v2  ;;  %2946 = vmatprep.subr.bf16.mxu1 %v2945_v29 }
   0xe   :  { %2595 = vmatprep.subr.bf16.mxu0 %v3179_v0 }
  0x11   :  { %2596 = vmatpush3.bf16.msra.mxu0 %v3164_v3  ;;  %v1828_v3 = vld [vmem:[%s3863_s7 + $0x10] sm:$0xff] }
  0x12   :  { %2597 = vmatprep.subr.bf16.mxu0 %v3179_v0 }
  0x15   :  { %2598 = vmatpush3.bf16.msra.mxu0 %v3165_v4  ;;  %v1829_v4 = vld [vmem:[%s3863_s7 + $0x18] sm:$0xff] }
  0x16   :  { %2599 = vmatprep.subr.bf16.mxu0 %v3179_v0  ;;  %v3013_v9 = vpack.c.bf16 %v1829_v4, %v1828_v3 }
  0x19   :  { %2600 = vmatpush3.bf16.msra.mxu0 %v3166_v5 }
  0x1a   :  { %2601 = vmatprep.subr.bf16.mxu0 %v3179_v0 }
  0x1d   :  { %2602 = vmatpush3.bf16.msra.mxu0 %v3167_v6 }
  0x1e   :  { %2603 = vmatprep.subr.bf16.mxu0 %v3179_v0 }
  0x21   :  { %2604 = vmatpush3.bf16.msra.mxu0 %v3168_v7  ;;  %v3419_v7 = vpack.c.bf16 %v590_v1, %v589_v59  ;;  %v761_v59 = vld [vmem:[%s3861_s3 + $0x78] sm:$0xff]  ;;  %v927_v1 = vld [vmem:[%s3861_s3 + $0x80] sm:$0xff] }
  0x22   :  { %2605 = vmatprep.subr.bf16.mxu0 %v3179_v0 }
  0x25   :  { %2606 = vmatpush3.bf16.msra.mxu0 %v3169_v10 }
  0x26   :  { %3002 = vmatprep.subr.bf16.mxu0 %v3307_v11 }
  0x28   :  { %2608 = vmatmul.mubr.bf16.vlgmr.msra.gmra.mrb[0].mxu0 %v3170_v12 }
  0x29   :  { %2611 = vmatprep.mubr.msk.bf16.mxu0 %vm3180_vm0, %v3179_v0  ;;  %3004 = vmatpush3.bf16.msra.mxu0 %v3307_v11 }
  0x2a   :  { %3006 = vmatprep.subr.bf16.mxu0 %v3356_v25 }
  0x2d   :  { %3008 = vmatpush3.bf16.msra.mxu0 %v3356_v25 }
  0x2e   :  { %3009 = vmatprep.subr.bf16.mxu0 %v3181_v26 }
  0x30   :  { %2612 = vmatmul.mubr.bf16.gmra.mrb[4].mxu0 %v3171_v13 }
  0x31   :  { %2615 = vmatprep.mubr.msk.bf16.mxu0 %vm3180_vm0, %v3179_v0 }
  0x38   :  { %2616 = vmatmul.mubr.bf16.gmra.mrb[8].mxu0 %v3172_v14 }
  0x39   :  { %2619 = vmatprep.mubr.msk.bf16.mxu0 %vm3180_vm0, %v3179_v0 }
  0x40   :  { %2620 = vmatmul.mubr.bf16.gmra.mrb[12].mxu0 %v3173_v15 }
  0x41   :  { %2623 = vmatprep.mubr.msk.bf16.mxu0 %vm3180_vm0, %v3179_v0 }
  0x48   :  { %2624 = vmatmul.mubr.bf16.gmra.mrb[16].mxu0 %v3174_v16 }
  0xfb   :  { %v199_v31 = vpop.f32.mrb[0].mxu0 }
  0xfc   :  { %v200_v32 = vadd.f32 %v3370_v30, %v199_v31  ;;  %v2609_v33 = vpop.f32.mrb[1].mxu0 }
  0xfd   :  { %v202_v34 = vpop.f32.mrb[2].mxu0 }
  0xfe   :  { %v238_v35 = vmax.f32 %v200_v32, 0.0  ;;  %v203_v36 = vadd.f32 %v3370_v30, %v202_v34  ;;  %v2610_v37 = vpop.f32.mrb[3].mxu0 }
 0x100   :  { %249 = vst.msk [vmem:[#allocation2] sm:$0xff] %vm248_vm1, %v238_v35  ;;  %v239_v38 = vmax.f32 %v203_v36, 0.0 }
 0x102   :  { %250 = vst.msk [vmem:[#allocation2 + $0x8] sm:$0xff] %vm248_vm1, %v239_v38 }
 0x103   :  { %v207_v39 = vpop.f32.mrb[4].mxu0 }
 0x104   :  { %v208_v40 = vadd.f32 %v3370_v30, %v207_v39  ;;  %v2613_v41 = vpop.f32.mrb[5].mxu0 }
 0x105   :  { %v210_v42 = vpop.f32.mrb[6].mxu0 }
 0x106   :  { %v240_v43 = vmax.f32 %v208_v40, 0.0  ;;  %v211_v44 = vadd.f32 %v3370_v30, %v210_v42  ;;  %v2614_v45 = vpop.f32.mrb[7].mxu0  ;;  %v1825_v40 = vld [vmem:[%s3864_s6] sm:$0x3]  ;;  %v591_v42 = vld [vmem:[%s3861_s3 + $0x50] sm:$0xff] }
 0x108   :  { %251 = vst.msk [vmem:[#allocation2 + $0x10] sm:$0xff] %vm248_vm1, %v240_v43  ;;  %v241_v46 = vmax.f32 %v211_v44, 0.0  ;;  %v592_v43 = vld [vmem:[%s3861_s3 + $0x58] sm:$0xff]  ;;  %v261_v44 = vld [vmem:[#allocation2] sm:$0xff] }
 0x109   :  { %v275_v47 = vld [vmem:[#allocation2 + $0x1] sm:$0xff]  ;;  %v2957_v45 = vpack.c.bf16 %v592_v43, %v591_v42 }
 0x10a   :  { %252 = vst.msk [vmem:[#allocation2 + $0x18] sm:$0xff] %vm248_vm1, %v241_v46  ;;  %2635 = vmatprep.mubr.msk.f32.mxu1 %vm248_vm1, %v275_v47  ;;  %v3476_v46 = vld [vmem:[#allocation2 + $0x8] sm:$0xff]  ;;  %v758_v47 = vld [vmem:[%s3861_s3 + $0x60] sm:$0xff] }
 0x10b   :  { %v215_v48 = vpop.f32.mrb[8].mxu0 }
 0x10c   :  { %v216_v50 = vadd.f32 %v3370_v30, %v215_v48  ;;  %v2617_v51 = vpop.f32.mrb[9].mxu0  ;;  %v759_v48 = vld [vmem:[%s3861_s3 + $0x68] sm:$0xff] }
 0x10d   :  { %v218_v55 = vpop.f32.mrb[10].mxu0 }
 0x10e   :  { %v242_v56 = vmax.f32 %v216_v50, 0.0  ;;  %v219_v57 = vadd.f32 %v3370_v30, %v218_v55  ;;  %v2618_v58 = vpop.f32.mrb[11].mxu0  ;;  %v2961_v50 = vpack.c.bf16 %v759_v48, %v758_v47  ;;  %v1915_v48 = vld [vmem:[%s3865_s9 + $0x20] sm:$0xff] }
 0x10f   :  { %v276_v60 = vld [vmem:[#allocation2 + $0x9] sm:$0xff] }
 0x110   :  { %v3398_v61 = vld [vmem:[#allocation2 + $0xe] sm:$0xff]  ;;  %253 = vst.msk [vmem:[#allocation2 + $0x20] sm:$0xff] %vm248_vm1, %v242_v56  ;;  %v243_v2 = vmax.f32 %v219_v57, 0.0  ;;  %2636 = vmatmul.mubr.msk.f32.vlgmr.msra.gmra.mrb[0].mxu1 %vm248_vm1, %v276_v60  ;;  %v579_v60 = vld [vmem:[#allocation2 + $0x2] sm:$0xff] }
 0x111   :  { %2819 = vmatprep.mubr.msk.f32.mxu0 %vm248_vm1, %v3398_v61  ;;  %v277_v5 = vld [vmem:[#allocation2 + $0x11] sm:$0xff]  ;;  %2948 = vmatpush3.bf16.msra.mxu1 %v2945_v29 }
 0x112   :  { %v3413_v6 = vld [vmem:[#allocation2 + $0x16] sm:$0xff]  ;;  %254 = vst.msk [vmem:[#allocation2 + $0x28] sm:$0xff] %vm248_vm1, %v243_v2  ;;  %2638 = vmatprep.mubr.msk.f32.mxu1 %vm248_vm1, %v277_v5  ;;  %2950 = vmatprep.subr.bf16.mxu1 %v2949_v63  ;;  %v928_v2 = vld [vmem:[%s3861_s3 + $0x88] sm:$0xff] }
 0x113   :  { %2820 = vmatmul.mubr.msk.f32.vlgmr.msra.gmra.mrb[20].mxu0 %vm248_vm1, %v3413_v6  ;;  %v223_v8 = vpop.f32.mrb[12].mxu0  ;;  %v3488_v49 = vld [vmem:[#allocation2 + $0x10] sm:$0xff]  ;;  %v3493_v51 = vld [vmem:[#allocation2 + $0x18] sm:$0xff]  ;;  %v2969_v4 = vpack.c.bf16 %v928_v2, %v927_v1 }
 0x114   :  { %3011 = vmatpush3.bf16.msra.mxu0 %v3010_v62  ;;  %v224_v10 = vadd.f32 %v3370_v30, %v223_v8  ;;  %v2621_v12 = vpop.f32.mrb[13].mxu0  ;;  %v760_v58 = vld [vmem:[%s3861_s3 + $0x70] sm:$0xff] }
 0x115   :  { %3012 = vmatprep.subr.bf16.mxu0 %v3181_v26  ;;  %v226_v13 = vpop.f32.mrb[14].mxu0  ;;  %2952 = vmatpush3.bf16.msra.mxu1 %v2949_v63  ;;  %v2965_v62 = vpack.c.bf16 %v761_v59, %v760_v58  ;;  %v580_v63 = vld [vmem:[#allocation2 + $0xa] sm:$0xff]  ;;  %v581_v3 = vld [vmem:[#allocation2 + $0x12] sm:$0xff]  ;;  %v1434_v58 = vld [vmem:[%s3861_s3 + $0xe0] sm:$0xff] }
 0x116   :  { %v244_v14 = vmax.f32 %v224_v10, 0.0  ;;  %v227_v15 = vadd.f32 %v3370_v30, %v226_v13  ;;  %v2622_v16 = vpop.f32.mrb[15].mxu0  ;;  %2954 = vmatprep.subr.bf16.mxu1 %v3419_v7  ;;  %v1435_v59 = vld [vmem:[%s3861_s3 + $0xe8] sm:$0xff]  ;;  %v1256_v1 = vld [vmem:[#allocation2 + $0x14] sm:$0xff] }
 0x117   :  { %v278_v17 = vld [vmem:[#allocation2 + $0x19] sm:$0xff]  ;;  %v748_v16 = vld [vmem:[#allocation2 + $0x6] sm:$0xff] }
 0x118   :  { %v3425_v18 = vld [vmem:[#allocation2 + $0x1e] sm:$0xff]  ;;  %3014 = vmatpush3.bf16.msra.mxu0 %v3013_v9  ;;  %255 = vst.msk [vmem:[#allocation2 + $0x30] sm:$0xff] %vm248_vm1, %v244_v14  ;;  %v245_v19 = vmax.f32 %v227_v15, 0.0  ;;  %2639 = vmatmul.mubr.msk.f32.gmra.mrb[2].mxu1 %vm248_vm1, %v278_v17  ;;  %v929_v14 = vld [vmem:[%s3861_s3 + $0x90] sm:$0xff] }
 0x119   :  { %2822 = vmatprep.mubr.msk.f32.mxu0 %vm248_vm1, %v3425_v18  ;;  %v279_v20 = vld [vmem:[#allocation2 + $0x21] sm:$0xff]  ;;  %3015 = vmatprep.subr.bf16.mxu0 %v3181_v26  ;;  %v930_v15 = vld [vmem:[%s3861_s3 + $0x98] sm:$0xff] }
 0x11a   :  { %v3431_v21 = vld [vmem:[#allocation2 + $0x26] sm:$0xff]  ;;  %256 = vst.msk [vmem:[#allocation2 + $0x38] sm:$0xff] %vm248_vm1, %v245_v19  ;;  %2641 = vmatprep.mubr.msk.f32.mxu1 %vm248_vm1, %v279_v20  ;;  %v582_v5 = vld [vmem:[#allocation2 + $0x1a] sm:$0xff]  ;;  %v2973_v17 = vpack.c.bf16 %v930_v15, %v929_v14 }
 0x11b   :  { %2823 = vmatmul.mubr.msk.f32.gmra.mrb[22].mxu0 %vm248_vm1, %v3431_v21  ;;  %v231_v22 = vpop.f32.mrb[16].mxu0  ;;  %v3497_v52 = vld [vmem:[#allocation2 + $0x20] sm:$0xff]  ;;  %v3501_v53 = vld [vmem:[#allocation2 + $0x28] sm:$0xff] }
 0x11c   :  { %v232_v23 = vadd.f32 %v3370_v30, %v231_v22  ;;  %v2625_v24 = vpop.f32.mrb[17].mxu0  ;;  %v1096_v19 = vld [vmem:[%s3861_s3 + $0xa0] sm:$0xff]  ;;  %v1097_v20 = vld [vmem:[%s3861_s3 + $0xa8] sm:$0xff] }
 0x11d   :  { %v234_v27 = vpop.f32.mrb[18].mxu0  ;;  %v2977_v22 = vpack.c.bf16 %v1097_v20, %v1096_v19  ;;  %v918_v24 = vld [vmem:[#allocation2 + $0xf] sm:$0xff] }
 0x11e   :  { %v246_v28 = vmax.f32 %v232_v23, 0.0  ;;  %v235_v29 = vadd.f32 %v3370_v30, %v234_v27  ;;  %v2626_v31 = vpop.f32.mrb[19].mxu0  ;;  %v1265_v27 = vld [vmem:[%s3861_s3 + $0xc0] sm:$0xff]  ;;  %v1433_v19 = vld [vmem:[#allocation2 + $0x55] sm:$0xff] }
 0x11f   :  { %v280_v32 = vld [vmem:[#allocation2 + $0x29] sm:$0xff]  ;;  %v1602_v20 = vld [vmem:[#allocation2 + $0x56] sm:$0xff] }
 0x120   :  { %v3440_v33 = vld [vmem:[#allocation2 + $0x2e] sm:$0xff]  ;;  %257 = vst.msk [vmem:[#allocation2 + $0x40] sm:$0xff] %vm248_vm1, %v246_v28  ;;  %v247_v34 = vmax.f32 %v235_v29, 0.0  ;;  %2642 = vmatmul.mubr.msk.f32.gmra.mrb[4].mxu1 %vm248_vm1, %v280_v32  ;;  %v919_v29 = vld [vmem:[#allocation2 + $0x17] sm:$0xff]  ;;  %v920_v32 = vld [vmem:[#allocation2 + $0x1f] sm:$0xff] }
 0x121   :  { %2825 = vmatprep.mubr.msk.f32.mxu0 %vm248_vm1, %v3440_v33  ;;  %v281_v35 = vld [vmem:[#allocation2 + $0x31] sm:$0xff]  ;;  %v1266_v28 = vld [vmem:[%s3861_s3 + $0xc8] sm:$0xff] }
 0x122   :  { %v3446_v36 = vld [vmem:[#allocation2 + $0x36] sm:$0xff]  ;;  %258 = vst.msk [vmem:[#allocation2 + $0x48] sm:$0xff] %vm248_vm1, %v247_v34  ;;  %2644 = vmatprep.mubr.msk.f32.mxu1 %vm248_vm1, %v281_v35  ;;  %v584_v8 = vld [vmem:[#allocation2 + $0x2a] sm:$0xff]  ;;  %v2985_v31 = vpack.c.bf16 %v1266_v28, %v1265_v27  ;;  %v2395_v28 = vld [vmem:[%s3866_s8] ss:$0 sm:$0xff] }
 0x123   :  { %2826 = vmatmul.mubr.msk.f32.gmra.mrb[24].mxu0 %vm248_vm1, %v3446_v36  ;;  %v3505_v54 = vld [vmem:[#allocation2 + $0x30] sm:$0xff]  ;;  %v3509_v55 = vld [vmem:[#allocation2 + $0x38] sm:$0xff] }
 0x124   :  { %v585_v9 = vld [vmem:[#allocation2 + $0x32] sm:$0xff] }
 0x125   :  { %v922_v34 = vld [vmem:[#allocation2 + $0x2f] sm:$0xff]  ;;  %v923_v35 = vld [vmem:[#allocation2 + $0x37] sm:$0xff] }
 0x126   :  { %v1259_v2 = vld [vmem:[#allocation2 + $0x2c] sm:$0xff]  ;;  %v1429_v15 = vld [vmem:[#allocation2 + $0x35] sm:$0xff] }
 0x127   :  { %v282_v30 = vld [vmem:[#allocation2 + $0x39] sm:$0xff]  ;;  %v1428_v14 = vld [vmem:[#allocation2 + $0x2d] sm:$0xff] }
 0x128   :  { %v3452_v37 = vld [vmem:[#allocation2 + $0x3e] sm:$0xff]  ;;  %2645 = vmatmul.mubr.msk.f32.gmra.mrb[6].mxu1 %vm248_vm1, %v282_v30 }
 0x129   :  { %2828 = vmatprep.mubr.msk.f32.mxu0 %vm248_vm1, %v3452_v37  ;;  %v283_v38 = vld [vmem:[#allocation2 + $0x41] sm:$0xff]  ;;  %v284_v41 = vld [vmem:[#allocation2 + $0x49] sm:$0xff] }
 0x12a   :  { %v3457_v39 = vld [vmem:[#allocation2 + $0x46] sm:$0xff]  ;;  %2647 = vmatprep.mubr.msk.f32.mxu1 %vm248_vm1, %v283_v38  ;;  %v586_v10 = vld [vmem:[#allocation2 + $0x3a] sm:$0xff]  ;;  %v1913_v38 = vld [vmem:[%s3865_s9 + $0x10] sm:$0xff] }
 0x12b   :  { %2829 = vmatmul.mubr.msk.f32.gmra.mrb[26].mxu0 %vm248_vm1, %v3457_v39  ;;  %v3513_v56 = vld [vmem:[#allocation2 + $0x40] sm:$0xff]  ;;  %v3517_v57 = vld [vmem:[#allocation2 + $0x48] sm:$0xff] }
 0x12c   :  { %2842 = vmatprep.mubr.msk.f32.mxu0 %vm3180_vm0, %v3179_v0  ;;  %2648 = vmatmul.mubr.msk.f32.gmra.mrb[8].mxu1 %vm248_vm1, %v284_v41  ;;  %v587_v12 = vld [vmem:[#allocation2 + $0x42] sm:$0xff]  ;;  %v588_v13 = vld [vmem:[#allocation2 + $0x4a] sm:$0xff]  ;;  %v1914_v41 = vld [vmem:[%s3865_s9 + $0x18] sm:$0xff] }
 0x12d   :  { %2658 = vmatprep.mubr.msk.f32.mxu1 %vm248_vm1, %v261_v44  ;;  %v1911_v30 = vld [vmem:[%s3865_s9] sm:$0xff]  ;;  %v3019_v42 = vpack.c.bf16 %v1914_v41, %v1913_v38  ;;  %v926_v43 = vld [vmem:[#allocation2 + $0x4f] sm:$0xff] }
 0x12e   :  { %v1267_v44 = vld [vmem:[%s3861_s3 + $0xd0] sm:$0xff]  ;;  %v2012_v38 = vld [vmem:[%s3867_s12 + $0x20] sm:$0xff] }
 0x12f   :  { %2843 = vmatmul.mubr.msk.f32.vlgmr.msra.gmra.mrb[28].mxu0 %vm248_vm1, %v1825_v40  ;;  %v2014_v41 = vld [vmem:[%s3867_s12 + $0x30] sm:$0xff] }
 0x130   :  { %2861 = vmatprep.mubr.msk.f32.mxu0 %vm3180_vm0, %v3179_v0  ;;  %2659 = vmatmul.mubr.msk.f32.vlgmr.msra.gmra.mrb[0].mxu1 %vm248_vm1, %v3476_v46 }
 0x131   :  { %2661 = vmatprep.mubr.msk.f32.mxu1 %vm248_vm1, %v3488_v49  ;;  %2956 = vmatpush3.bf16.msra.mxu1 %v3419_v7  ;;  %v583_v7 = vld [vmem:[#allocation2 + $0x22] sm:$0xff] }
 0x132   :  { %2958 = vmatprep.subr.bf16.mxu1 %v2957_v45 }
 0x134   :  { %2662 = vmatmul.mubr.msk.f32.gmra.mrb[2].mxu1 %vm248_vm1, %v3493_v51 }
 0x135   :  { %2664 = vmatprep.mubr.msk.f32.mxu1 %vm248_vm1, %v3497_v52  ;;  %2960 = vmatpush3.bf16.msra.mxu1 %v2957_v45  ;;  %v1268_v45 = vld [vmem:[%s3861_s3 + $0xd8] sm:$0xff] }
 0x136   :  { %2962 = vmatprep.subr.bf16.mxu1 %v2961_v50  ;;  %v2989_v47 = vpack.c.bf16 %v1268_v45, %v1267_v44  ;;  %v2394_v45 = vld [vmem:[%s3868_s4] ss:$0 sm:$0xff] }
 0x138   :  { %2665 = vmatmul.mubr.msk.f32.gmra.mrb[4].mxu1 %vm248_vm1, %v3501_v53 }
 0x139   :  { %2667 = vmatprep.mubr.msk.f32.mxu1 %vm248_vm1, %v3505_v54 }
 0x13c   :  { %2668 = vmatmul.mubr.msk.f32.gmra.mrb[6].mxu1 %vm248_vm1, %v3509_v55 }
 0x13d   :  { %2670 = vmatprep.mubr.msk.f32.mxu1 %vm248_vm1, %v3513_v56 }
 0x140   :  { %2671 = vmatmul.mubr.msk.f32.gmra.mrb[8].mxu1 %vm248_vm1, %v3517_v57 }
 0x141   :  { %2681 = vmatprep.mubr.msk.f32.mxu1 %vm248_vm1, %v579_v60  ;;  %v2993_v60 = vpack.c.bf16 %v1435_v59, %v1434_v58  ;;  %v1780_v59 = vld [vmem:[%s3869_s5 + $0x8] sm:$0xff] }
 0x144   :  { %2682 = vmatmul.mubr.msk.f32.vlgmr.msra.gmra.mrb[0].mxu1 %vm248_vm1, %v580_v63  ;;  %v1255_v63 = vld [vmem:[#allocation2 + $0xc] sm:$0xff] }
 0x145   :  { %2684 = vmatprep.mubr.msk.f32.mxu1 %vm248_vm1, %v581_v3  ;;  %2964 = vmatpush3.bf16.msra.mxu1 %v2961_v50  ;;  %v1916_v50 = vld [vmem:[%s3865_s9 + $0x28] sm:$0xff]  ;;  %v1260_v3 = vld [vmem:[#allocation2 + $0x34] sm:$0xff] }
 0x146   :  { %2966 = vmatprep.subr.bf16.mxu1 %v2965_v62 }
 0x148   :  { %2685 = vmatmul.mubr.msk.f32.gmra.mrb[2].mxu1 %vm248_vm1, %v582_v5  ;;  %v1262_v5 = vld [vmem:[#allocation2 + $0x44] sm:$0xff] }
 0x149   :  { %2687 = vmatprep.mubr.msk.f32.mxu1 %vm248_vm1, %v583_v7  ;;  %2968 = vmatpush3.bf16.msra.mxu1 %v2965_v62  ;;  %v1917_v62 = vld [vmem:[%s3865_s9 + $0x30] sm:$0xff] }
 0x14a   :  { %2970 = vmatprep.subr.bf16.mxu1 %v2969_v4  ;;  %v1263_v7 = vld [vmem:[#allocation2 + $0x4c] sm:$0xff] }
 0x14c   :  { %2688 = vmatmul.mubr.msk.f32.gmra.mrb[4].mxu1 %vm248_vm1, %v584_v8  ;;  %v1264_v8 = vld [vmem:[#allocation2 + $0x54] sm:$0xff] }
 0x14d   :  { %2690 = vmatprep.mubr.msk.f32.mxu1 %vm248_vm1, %v585_v9  ;;  %v1424_v9 = vld [vmem:[#allocation2 + $0xd] sm:$0xff] }
 0x150   :  { %2691 = vmatmul.mubr.msk.f32.gmra.mrb[6].mxu1 %vm248_vm1, %v586_v10  ;;  %v1425_v10 = vld [vmem:[#allocation2 + $0x15] sm:$0xff] }
 0x151   :  { %2693 = vmatprep.mubr.msk.f32.mxu1 %vm248_vm1, %v587_v12  ;;  %v1426_v12 = vld [vmem:[#allocation2 + $0x1d] sm:$0xff] }
 0x154   :  { %2694 = vmatmul.mubr.msk.f32.gmra.mrb[8].mxu1 %vm248_vm1, %v588_v13  ;;  %v1427_v13 = vld [vmem:[#allocation2 + $0x25] sm:$0xff] }
 0x155   :  { %2704 = vmatprep.mubr.msk.f32.mxu1 %vm248_vm1, %v748_v16  ;;  %v1430_v16 = vld [vmem:[#allocation2 + $0x3d] sm:$0xff] }
 0x158   :  { %2705 = vmatmul.mubr.msk.f32.vlgmr.msra.gmra.mrb[0].mxu1 %vm248_vm1, %v3398_v61  ;;  %v3572_v61 = vld [vmem:[#allocation2 + $0x4e] sm:$0xff] }
 0x159   :  { %2707 = vmatprep.mubr.msk.f32.mxu1 %vm248_vm1, %v3413_v6  ;;  %2972 = vmatpush3.bf16.msra.mxu1 %v2969_v4  ;;  %v1098_v6 = vld [vmem:[%s3861_s3 + $0xb0] sm:$0xff]  ;;  %v1261_v4 = vld [vmem:[#allocation2 + $0x3c] sm:$0xff] }
 0x15a   :  { %2974 = vmatprep.subr.bf16.mxu1 %v2973_v17 }
 0x15c   :  { %2708 = vmatmul.mubr.msk.f32.gmra.mrb[2].mxu1 %vm248_vm1, %v3425_v18  ;;  %v1099_v18 = vld [vmem:[%s3861_s3 + $0xb8] sm:$0xff] }
 0x15d   :  { %2710 = vmatprep.mubr.msk.f32.mxu1 %vm248_vm1, %v3431_v21  ;;  %2976 = vmatpush3.bf16.msra.mxu1 %v2973_v17  ;;  %v917_v21 = vld [vmem:[#allocation2 + $0x7] sm:$0xff]  ;;  %v2981_v23 = vpack.c.bf16 %v1099_v18, %v1098_v6 }
 0x15e   :  { %2978 = vmatprep.subr.bf16.mxu1 %v2977_v22  ;;  %v1431_v17 = vld [vmem:[#allocation2 + $0x45] sm:$0xff] }
 0x160   :  { %2711 = vmatmul.mubr.msk.f32.gmra.mrb[4].mxu1 %vm248_vm1, %v3440_v33  ;;  %v921_v33 = vld [vmem:[#allocation2 + $0x27] sm:$0xff] }
 0x161   :  { %2713 = vmatprep.mubr.msk.f32.mxu1 %vm248_vm1, %v3446_v36  ;;  %v924_v36 = vld [vmem:[#allocation2 + $0x3f] sm:$0xff] }
 0x164   :  { %2714 = vmatmul.mubr.msk.f32.gmra.mrb[6].mxu1 %vm248_vm1, %v3452_v37  ;;  %v1912_v37 = vld [vmem:[%s3865_s9 + $0x8] sm:$0xff] }
 0x165   :  { %2716 = vmatprep.mubr.msk.f32.mxu1 %vm248_vm1, %v3457_v39  ;;  %v925_v39 = vld [vmem:[#allocation2 + $0x47] sm:$0xff]  ;;  %v3016_v40 = vpack.c.bf16 %v1912_v37, %v1911_v30  ;;  %v2011_v30 = vld [vmem:[%s3867_s12 + $0x18] sm:$0xff] }
 0x167   :  { %3017 = vmatpush3.bf16.msra.mxu0 %v3016_v40 }
 0x168   :  { %2717 = vmatmul.mubr.msk.f32.gmra.mrb[8].mxu1 %vm248_vm1, %v3572_v61  ;;  %3018 = vmatprep.subr.bf16.mxu0 %v3181_v26 }
 0x169   :  { %2727 = vmatprep.mubr.msk.f32.mxu1 %vm248_vm1, %v917_v21 }
 0x16b   :  { %3020 = vmatpush3.bf16.msra.mxu0 %v3019_v42  ;;  %v2015_v42 = vld [vmem:[%s3867_s12 + $0x38] sm:$0xff] }
 0x16c   :  { %2728 = vmatmul.mubr.msk.f32.vlgmr.msra.gmra.mrb[0].mxu1 %vm248_vm1, %v918_v24  ;;  %3021 = vmatprep.subr.bf16.mxu0 %v3181_v26 }
 0x16d   :  { %2730 = vmatprep.mubr.msk.f32.mxu1 %vm248_vm1, %v919_v29  ;;  %2980 = vmatpush3.bf16.msra.mxu1 %v2977_v22 }
 0x16e   :  { %2982 = vmatprep.subr.bf16.mxu1 %v2981_v23 }
 0x170   :  { %2731 = vmatmul.mubr.msk.f32.gmra.mrb[2].mxu1 %vm248_vm1, %v920_v32 }
 0x171   :  { %2733 = vmatprep.mubr.msk.f32.mxu1 %vm248_vm1, %v921_v33  ;;  %2984 = vmatpush3.bf16.msra.mxu1 %v2981_v23  ;;  %v2008_v33 = vld [vmem:[%s3867_s12] sm:$0xff] }
 0x172   :  { %2986 = vmatprep.subr.bf16.mxu1 %v2985_v31 }
 0x174   :  { %2734 = vmatmul.mubr.msk.f32.gmra.mrb[4].mxu1 %vm248_vm1, %v922_v34  ;;  %v2009_v34 = vld [vmem:[%s3867_s12 + $0x8] sm:$0xff] }
 0x175   :  { %2736 = vmatprep.mubr.msk.f32.mxu1 %vm248_vm1, %v923_v35  ;;  %v2010_v35 = vld [vmem:[%s3867_s12 + $0x10] sm:$0xff] }
 0x176   :  { %v3031_v37 = vpack.c.bf16 %v2011_v30, %v2010_v35 }
 0x178   :  { %2737 = vmatmul.mubr.msk.f32.gmra.mrb[6].mxu1 %vm248_vm1, %v924_v36  ;;  %v3028_v36 = vpack.c.bf16 %v2009_v34, %v2008_v33 }
 0x179   :  { %2739 = vmatprep.mubr.msk.f32.mxu1 %vm248_vm1, %v925_v39  ;;  %v2013_v39 = vld [vmem:[%s3867_s12 + $0x28] sm:$0xff] }
 0x17a   :  { %v3034_v40 = vpack.c.bf16 %v2013_v39, %v2012_v38 }
 0x17c   :  { %2740 = vmatmul.mubr.msk.f32.gmra.mrb[8].mxu1 %vm248_vm1, %v926_v43  ;;  %v3037_v43 = vpack.c.bf16 %v2015_v42, %v2014_v41 }
 0x17d   :  { %2750 = vmatprep.mubr.msk.f32.mxu1 %vm248_vm1, %v3476_v46  ;;  %v3022_v46 = vpack.c.bf16 %v1916_v50, %v1915_v48 }
 0x17f   :  { %3023 = vmatpush3.bf16.msra.mxu0 %v3022_v46 }
 0x180   :  { %2751 = vmatmul.mubr.msk.f32.vlgmr.msra.gmra.mrb[0].mxu1 %vm248_vm1, %v3488_v49  ;;  %3024 = vmatprep.subr.bf16.mxu0 %v3181_v26  ;;  %v1918_v49 = vld [vmem:[%s3865_s9 + $0x38] sm:$0xff] }
 0x181   :  { %2753 = vmatprep.mubr.msk.f32.mxu1 %vm248_vm1, %v3493_v51  ;;  %2988 = vmatpush3.bf16.msra.mxu1 %v2985_v31  ;;  %v3025_v51 = vpack.c.bf16 %v1918_v49, %v1917_v62  ;;  %v1779_v62 = vld [vmem:[%s3869_s5] sm:$0xff] }
 0x182   :  { %2990 = vmatprep.subr.bf16.mxu1 %v2989_v47 }
 0x183   :  { %3026 = vmatpush3.bf16.msra.mxu0 %v3025_v51 }
 0x184   :  { %2754 = vmatmul.mubr.msk.f32.gmra.mrb[2].mxu1 %vm248_vm1, %v3497_v52  ;;  %3027 = vmatprep.subr.bf16.mxu0 %v3181_v26  ;;  %v1095_v52 = vld [vmem:[#allocation2 + $0x50] sm:$0xff] }
 0x185   :  { %2756 = vmatprep.mubr.msk.f32.mxu1 %vm248_vm1, %v3501_v53  ;;  %2992 = vmatpush3.bf16.msra.mxu1 %v2989_v47  ;;  %v1436_v53 = vld [vmem:[%s3861_s3 + $0xf0] sm:$0xff] }
 0x186   :  { %2994 = vmatprep.subr.bf16.mxu1 %v2993_v60 }
 0x188   :  { %2757 = vmatmul.mubr.msk.f32.gmra.mrb[4].mxu1 %vm248_vm1, %v3505_v54  ;;  %v1437_v54 = vld [vmem:[%s3861_s3 + $0xf8] sm:$0xff] }
 0x189   :  { %2759 = vmatprep.mubr.msk.f32.mxu1 %vm248_vm1, %v3509_v55  ;;  %v2997_v55 = vpack.c.bf16 %v1437_v54, %v1436_v53  ;;  %v1782_v53 = vld [vmem:[%s3869_s5 + $0x18] sm:$0xff] }
 0x18c   :  { %2760 = vmatmul.mubr.msk.f32.gmra.mrb[6].mxu1 %vm248_vm1, %v3513_v56  ;;  %v1257_v56 = vld [vmem:[#allocation2 + $0x1c] sm:$0xff] }
 0x18d   :  { %2762 = vmatprep.mubr.msk.f32.mxu1 %vm248_vm1, %v3517_v57  ;;  %v1258_v57 = vld [vmem:[#allocation2 + $0x24] sm:$0xff] }
 0x190   :  { %2763 = vmatmul.mubr.msk.f32.gmra.mrb[8].mxu1 %vm248_vm1, %v1095_v52 }
 0x191   :  { %2773 = vmatprep.mubr.msk.f32.mxu1 %vm248_vm1, %v1255_v63 }
 0x194   :  { %2774 = vmatmul.mubr.msk.f32.vlgmr.msra.gmra.mrb[0].mxu1 %vm248_vm1, %v1256_v1 }
 0x195   :  { %2776 = vmatprep.mubr.msk.f32.mxu1 %vm248_vm1, %v1257_v56  ;;  %2996 = vmatpush3.bf16.msra.mxu1 %v2993_v60 }
 0x196   :  { %2998 = vmatprep.subr.bf16.mxu1 %v2997_v55 }
 0x198   :  { %2777 = vmatmul.mubr.msk.f32.gmra.mrb[2].mxu1 %vm248_vm1, %v1258_v57 }
 0x199   :  { %2779 = vmatprep.mubr.msk.f32.mxu1 %vm248_vm1, %v1259_v2  ;;  %3000 = vmatpush3.bf16.msra.mxu1 %v2997_v55  ;;  %v1781_v55 = vld [vmem:[%s3869_s5 + $0x10] sm:$0xff] }
 0x19a   :  { %3075 = vmatprep.subr.bf16.mxu1 %v3307_v11 }
 0x19c   :  { %2780 = vmatmul.mubr.msk.f32.gmra.mrb[4].mxu1 %vm248_vm1, %v1260_v3 }
 0x19d   :  { %2782 = vmatprep.mubr.msk.f32.mxu1 %vm248_vm1, %v1261_v4 }
 0x1a0   :  { %2783 = vmatmul.mubr.msk.f32.gmra.mrb[6].mxu1 %vm248_vm1, %v1262_v5 }
 0x1a1   :  { %2785 = vmatprep.mubr.msk.f32.mxu1 %vm248_vm1, %v1263_v7 }
 0x1a4   :  { %2786 = vmatmul.mubr.msk.f32.gmra.mrb[8].mxu1 %vm248_vm1, %v1264_v8 }
 0x1a5   :  { %2796 = vmatprep.mubr.msk.f32.mxu1 %vm248_vm1, %v1424_v9 }
 0x1a8   :  { %2797 = vmatmul.mubr.msk.f32.vlgmr.msra.gmra.mrb[0].mxu1 %vm248_vm1, %v1425_v10  ;;  %v1783_v10 = vld [vmem:[%s3869_s5 + $0x20] sm:$0xff] }
 0x1a9   :  { %2799 = vmatprep.mubr.msk.f32.mxu1 %vm248_vm1, %v1426_v12  ;;  %3077 = vmatpush3.bf16.msra.mxu1 %v3307_v11  ;;  %v1432_v11 = vld [vmem:[#allocation2 + $0x4d] sm:$0xff] }
 0x1aa   :  { %3076 = vmatprep.subr.bf16.mxu1 %v3356_v25 }
 0x1ac   :  { %2800 = vmatmul.mubr.msk.f32.gmra.mrb[2].mxu1 %vm248_vm1, %v1427_v13 }
 0x1ad   :  { %2802 = vmatprep.mubr.msk.f32.mxu1 %vm248_vm1, %v1428_v14  ;;  %3078 = vmatpush3.bf16.msra.mxu1 %v3356_v25 }
 0x1b0   :  { %2803 = vmatmul.mubr.msk.f32.gmra.mrb[4].mxu1 %vm248_vm1, %v1429_v15 }
 0x1b1   :  { %2805 = vmatprep.mubr.msk.f32.mxu1 %vm248_vm1, %v1430_v16 }
 0x1b4   :  { %2806 = vmatmul.mubr.msk.f32.gmra.mrb[6].mxu1 %vm248_vm1, %v1431_v17 }
 0x1b5   :  { %2808 = vmatprep.mubr.msk.f32.mxu1 %vm248_vm1, %v1432_v11 }
 0x1b8   :  { %2809 = vmatmul.mubr.msk.f32.gmra.mrb[8].mxu1 %vm248_vm1, %v1433_v19 }
 0x1b9   :  { %2831 = vmatprep.mubr.msk.f32.mxu1 %vm248_vm1, %v3572_v61 }
 0x1c0   :  { %2832 = vmatmul.mubr.msk.f32.vlgmr.msra.gmra.mrb[8].mxu1 %vm248_vm1, %v1602_v20 }
 0x1e6   :  { %v2821_v25 = vpop.f32.mrb[20].mxu0 }
 0x1e7   :  { %v1703_v22 = vpop.f32.mrb[21].mxu0 }
 0x1ee   :  { %v2824_v6 = vpop.f32.mrb[22].mxu0 }
 0x1ef   :  { %v1713_v18 = vpop.f32.mrb[23].mxu0 }
 0x1f6   :  { %v2827_v21 = vpop.f32.mrb[24].mxu0 }
 0x1f7   :  { %v1723_v23 = vpop.f32.mrb[25].mxu0 }
 0x1fe   :  { %v3690_v24 = vpop.f32.mrb[26].mxu0 }
 0x1ff   :  { %v3692_v27 = vpop.f32.mrb[27].mxu0 }
 0x202   :  { %v1906_v29 = vpop.f32.mrb[28].mxu0 }
 0x203   :  { %v1907_v31 = vadd.f32 %v2395_v28, %v1906_v29  ;;  %v2844_v61 = vpop.f32.mrb[29].mxu0 }
 0x205   :  { %v1910_v32 = vmax.f32 %v1907_v31, 0.0 }
 0x207   :  { %2862 = vmatmul.mubr.msk.f32.vlgmr.msra.gmra.mrb[30].mxu0 %vm1794_vm2, %v1910_v32 }
 0x208   :  { %2880 = vmatprep.mubr.msk.f32.mxu0 %vm3180_vm0, %v3179_v0  ;;  %3029 = vmatpush3.bf16.msra.mxu0 %v3028_v36 }
 0x209   :  { %3030 = vmatprep.subr.bf16.mxu0 %v3181_v26 }
 0x20c   :  { %3032 = vmatpush3.bf16.msra.mxu0 %v3031_v37 }
 0x20d   :  { %3033 = vmatprep.subr.bf16.mxu0 %v3181_v26 }
 0x210   :  { %3035 = vmatpush3.bf16.msra.mxu0 %v3034_v40 }
 0x211   :  { %3036 = vmatprep.subr.bf16.mxu0 %v3181_v26 }
 0x214   :  { %3038 = vmatpush3.bf16.msra.mxu0 %v3037_v43 }
 0x215   :  { %3039 = vmatprep.subr.bf16.mxu0 %v3181_v26 }
 0x27b   :  { %v2798_v44 = vpop.f32.mrb[0].mxu1 }
 0x27c   :  { %v3079_v47 = vadd.f32 %v2821_v25, %v2798_v44  ;;  %v1534_v48 = vpop.f32.mrb[1].mxu1 }
 0x27d   :  { %v3080_v50 = vadd.f32 %v1703_v22, %v1534_v48 }
 0x27e   :  { %v1770_v58 = vadd.f32 %v3079_v47, %v2394_v45 }
 0x27f   :  { %v1769_v46 = vadd.f32 %v3080_v50, %v2394_v45  ;;  %v2801_v60 = vpop.f32.mrb[2].mxu1 }
 0x280   :  { %v3081_v49 = vadd.f32 %v2824_v6, %v2801_v60  ;;  %v1544_v51 = vpop.f32.mrb[3].mxu1  ;;  %v1785_v54 = vadd.f32 %v1780_v59, %v1770_v58 }
 0x281   :  { %v3082_v52 = vadd.f32 %v1713_v18, %v1544_v51  ;;  %v1784_v1 = vadd.f32 %v1779_v62, %v1769_v46 }
 0x282   :  { %v1772_v63 = vadd.f32 %v3081_v49, %v2394_v45  ;;  %v1796_v8 = vsel %vm1794_vm2, %v1785_v54, -inf  ;;  %v2000_v54 = vld [vmem:[%s3871_s11] sm:$0xff] }
 0x283   :  { %v1771_v56 = vadd.f32 %v3082_v52, %v2394_v45  ;;  %v2804_v57 = vpop.f32.mrb[4].mxu1  ;;  %v1795_v13 = vsel %vm1794_vm2, %v1784_v1, -inf }
 0x284   :  { %v3083_v2 = vadd.f32 %v2827_v21, %v2804_v57  ;;  %v1554_v3 = vpop.f32.mrb[5].mxu1  ;;  %v1787_v4 = vadd.f32 %v1782_v53, %v1772_v63  ;;  %v2001_v63 = vld [vmem:[%s3871_s11 + $0x8] sm:$0xff] }
 0x285   :  { %v1786_v5 = vadd.f32 %v1781_v55, %v1771_v56  ;;  %v3084_v7 = vadd.f32 %v1723_v23, %v1554_v3  ;;  %v3040_v57 = vpack.c.bf16 %v2001_v63, %v2000_v54  ;;  %v2002_v3 = vld [vmem:[%s3871_s11 + $0x10] sm:$0xff] }
 0x286   :  { %v1774_v9 = vadd.f32 %v3083_v2, %v2394_v45  ;;  %v1799_v12 = vsel %vm1794_vm2, %v1787_v4, -inf  ;;  %v2003_v4 = vld [vmem:[%s3871_s11 + $0x18] sm:$0xff] }
 0x287   :  { %v1797_v14 = vsel %vm1794_vm2, %v1786_v5, -inf  ;;  %v1773_v15 = vadd.f32 %v3084_v7, %v2394_v45  ;;  %v2807_v16 = vpop.f32.mrb[6].mxu1  ;;  %v1800_v17 = vmax.f32 %v1796_v8, %v1799_v12  ;;  %v3043_v5 = vpack.c.bf16 %v2003_v4, %v2002_v3  ;;  %v2004_v7 = vld [vmem:[%s3871_s11 + $0x20] sm:$0xff]  ;;  %v2005_v8 = vld [vmem:[%s3871_s11 + $0x28] sm:$0xff]  ;;  %v2007_v12 = vld [vmem:[%s3871_s11 + $0x38] sm:$0xff] }
 0x288   :  { %v1798_v11 = vmax.f32 %v1795_v13, %v1797_v14  ;;  %v3085_v19 = vadd.f32 %v3690_v24, %v2807_v16  ;;  %v1564_v20 = vpop.f32.mrb[7].mxu1  ;;  %v1789_v6 = vadd.f32 %v1779_v62, %v1774_v9  ;;  %v3046_v9 = vpack.c.bf16 %v2005_v8, %v2004_v7  ;;  %v2174_v14 = vld [vmem:[%s3872_s14] sm:$0xff] }
 0x289   :  { %v3086_v25 = vadd.f32 %v3692_v27, %v1564_v20  ;;  %v1788_v22 = vadd.f32 %v1783_v10, %v1773_v15  ;;  %v2175_v15 = vld [vmem:[%s3872_s14 + $0x8] sm:$0xff]  ;;  %v2178_v20 = vld [vmem:[%s3872_s14 + $0x20] sm:$0xff] }
 0x28a   :  { %v1776_v18 = vadd.f32 %v3085_v19, %v2394_v45  ;;  %v1810_v29 = vsel %vm1794_vm2, %v1789_v6, -inf  ;;  %v3052_v16 = vpack.c.bf16 %v2175_v15, %v2174_v14  ;;  %v2181_v6 = vld [vmem:[%s3872_s14 + $0x38] sm:$0xff] }
 0x28b   :  { %v1801_v21 = vsel %vm1794_vm2, %v1788_v22, -inf  ;;  %v1775_v33 = vadd.f32 %v3086_v25, %v2394_v45  ;;  %v2179_v25 = vld [vmem:[%s3872_s14 + $0x28] sm:$0xff] }
 0x28c   :  { %v1791_v23 = vadd.f32 %v1781_v55, %v1776_v18  ;;  %v1802_v28 = vmax.f32 %v1798_v11, %v1801_v21  ;;  %v2177_v11 = vld [vmem:[%s3872_s14 + $0x18] sm:$0xff]  ;;  %v3058_v22 = vpack.c.bf16 %v2179_v25, %v2178_v20  ;;  %v2182_v18 = vld [vmem:[%s3872_s14 + $0x40] sm:$0xff] }
 0x28d   :  { %v1790_v30 = vadd.f32 %v1780_v59, %v1775_v33  ;;  %v2187_v33 = vld [vmem:[%s3872_s14 + $0x68] sm:$0xff] }
 0x28e   :  { %v1812_v31 = vsel %vm1794_vm2, %v1791_v23, -inf  ;;  %v1803_v61 = vmax.f32 %v1802_v28, %v1800_v17  ;;  %v2176_v17 = vld [vmem:[%s3872_s14 + $0x10] sm:$0xff]  ;;  %v2183_v23 = vld [vmem:[%s3872_s14 + $0x48] sm:$0xff] }
 0x28f   :  { %v1813_v32 = vmax.f32 %v1810_v29, %v1812_v31  ;;  %v1811_v42 = vsel %vm1794_vm2, %v1790_v30, -inf  ;;  %v3055_v19 = vpack.c.bf16 %v2177_v11, %v2176_v17  ;;  %v3064_v28 = vpack.c.bf16 %v2183_v23, %v2182_v18  ;;  %v2184_v29 = vld [vmem:[%s3872_s14 + $0x50] sm:$0xff]  ;;  %v2185_v31 = vld [vmem:[%s3872_s14 + $0x58] sm:$0xff] }
 0x290   :  { %v1804_v36 = vrot.slane %v1803_v61, 4 }
 0x292   :  { %v1805_v40 = vmax.f32 %v1803_v61, %v1804_v36  ;;  %v3067_v61 = vpack.c.bf16 %v2185_v31, %v2184_v29 }
 0x293   :  { %v2833_v34 = vpop.f32.mrb[8].mxu1 }
 0x294   :  { %v1778_v35 = vadd.f32 %v2833_v34, %v2394_v45  ;;  %v1743_v24 = vpop.f32.mrb[9].mxu1  ;;  %v1806_v47 = vrot.slane %v1805_v40, 2 }
 0x295   :  { %v1777_v27 = vadd.f32 %v2394_v45, %v1743_v24  ;;  %v2189_v24 = vld [vmem:[%s3872_s14 + $0x78] sm:$0xff] }
 0x296   :  { %v1793_v37 = vadd.f32 %v1783_v10, %v1778_v35  ;;  %v1807_v46 = vmax.f32 %v1805_v40, %v1806_v47  ;;  %v2006_v10 = vld [vmem:[%s3871_s11 + $0x30] sm:$0xff] }
 0x297   :  { %v1792_v38 = vadd.f32 %v1782_v53, %v1777_v27  ;;  %v2397_v53 = vld [vmem:[%s3870_s10] ss:$0 sm:$0xff]  ;;  %v3049_v13 = vpack.c.bf16 %v2007_v12, %v2006_v10  ;;  %v2188_v35 = vld [vmem:[%s3872_s14 + $0x70] sm:$0xff] }
 0x298   :  { %v1816_v39 = vsel %vm1794_vm2, %v1793_v37, -inf  ;;  %v1808_v59 = vrot.slane %v1807_v46, 1  ;;  %v3073_v36 = vpack.c.bf16 %v2189_v24, %v2188_v35 }
 0x299   :  { %v1817_v41 = vmax.f32 %v1813_v32, %v1816_v39  ;;  %v1814_v43 = vsel %vm1794_vm2, %v1792_v38, -inf  ;;  %v2186_v32 = vld [vmem:[%s3872_s14 + $0x60] sm:$0xff] }
 0x29a   :  { %v1815_v44 = vmax.f32 %v1811_v42, %v1814_v43  ;;  %v1809_v49 = vmax.f32 %v1807_v46, %v1808_v59  ;;  %v3070_v34 = vpack.c.bf16 %v2187_v33, %v2186_v32  ;;  %v2401_v38 = vld [vmem:[%s3873_s13] ss:$0 sm:$0xff]  ;;  %v2267_v42 = vlaneseq }
 0x29c   :  { %v1818_v48 = vmax.f32 %v1817_v41, %v1815_v44  ;;  %v2268_v43 = vand.u32 127, %v2267_v42  ;;  %v2402_v44 = vld [vmem:[%s3874_s15] ss:$0 sm:$0xff] }
 0x29e   :  { %v1819_v50 = vrot.slane %v1818_v48, 4  ;;  %vm2269_vm4 = vcmp.lt.s32.totalorder %v2268_v43, 8  ;;  %vm2283_vm6 = vcmp.eq.s32.totalorder %v2268_v43, 8 }
 0x2a0   :  { %v1820_v58 = vmax.f32 %v1818_v48, %v1819_v50 }
 0x2a2   :  { %v1821_v60 = vrot.slane %v1820_v58, 2 }
 0x2a4   :  { %v1822_v62 = vmax.f32 %v1820_v58, %v1821_v60 }
 0x2a6   :  { %v1823_v45 = vrot.slane %v1822_v62, 1 }
 0x2a8   :  { %v1824_v51 = vmax.f32 %v1822_v62, %v1823_v45 }
 0x2aa   :  { %v2092_v52 = vsel %vm2091_vm3, %v1824_v51, %v1809_v49 }
 0x2da   :  { %v1995_v55 = vpop.f32.mrb[30].mxu0 }
 0x2db   :  { %v1996_v1 = vadd.f32 %v2397_v53, %v1995_v55  ;;  %v2863_v56 = vpop.f32.mrb[31].mxu0 }
 0x2dd   :  { %v1999_v2 = vmax.f32 %v1996_v1, 0.0 }
 0x2df   :  { %2881 = vmatmul.mubr.msk.f32.vlgmr.msra.gmra.mrb[32].mxu0 %vm1794_vm2, %v1999_v2 }
 0x2e0   :  { %3041 = vmatpush3.bf16.msra.mxu0 %v3040_v57  ;;  %2899 = vmatprep.mubr.msk.f32.mxu0 %vm3180_vm0, %v3179_v0 }
 0x2e1   :  { %3042 = vmatprep.subr.bf16.mxu0 %v3181_v26 }
 0x2e4   :  { %3044 = vmatpush3.bf16.msra.mxu0 %v3043_v5 }
 0x2e5   :  { %3045 = vmatprep.subr.bf16.mxu0 %v3181_v26 }
 0x2e8   :  { %3047 = vmatpush3.bf16.msra.mxu0 %v3046_v9 }
 0x2e9   :  { %3048 = vmatprep.subr.bf16.mxu0 %v3181_v26 }
 0x2ec   :  { %3050 = vmatpush3.bf16.msra.mxu0 %v3049_v13 }
 0x2ed   :  { %3051 = vmatprep.subr.bf16.mxu0 %v3181_v26 }
 0x2ef   :  { %2900 = vmatmul.mubr.msk.f32.vlgmr.msra.gmra.mrb[34].mxu0 %vm1794_vm2, %v2092_v52 }
 0x2f0   :  { %3053 = vmatpush3.bf16.msra.mxu0 %v3052_v16  ;;  %2934 = vmatprep.mubr.msk.f32.mxu0 %vm3180_vm0, %v3179_v0  ;;  %v2180_v0 = vld [vmem:[%s3872_s14 + $0x30] sm:$0xff] }
 0x2f1   :  { %3054 = vmatprep.subr.bf16.mxu0 %v3181_v26  ;;  %v3061_v21 = vpack.c.bf16 %v2181_v6, %v2180_v0 }
 0x2f4   :  { %3056 = vmatpush3.bf16.msra.mxu0 %v3055_v19 }
 0x2f5   :  { %3057 = vmatprep.subr.bf16.mxu0 %v3181_v26 }
 0x2f8   :  { %3059 = vmatpush3.bf16.msra.mxu0 %v3058_v22 }
 0x2f9   :  { %3060 = vmatprep.subr.bf16.mxu0 %v3181_v26 }
 0x2fc   :  { %3062 = vmatpush3.bf16.msra.mxu0 %v3061_v21 }
 0x2fd   :  { %3063 = vmatprep.subr.bf16.mxu0 %v3181_v26 }
 0x300   :  { %3065 = vmatpush3.bf16.msra.mxu0 %v3064_v28 }
 0x301   :  { %3066 = vmatprep.subr.bf16.mxu0 %v3181_v26 }
 0x304   :  { %3068 = vmatpush3.bf16.msra.mxu0 %v3067_v61 }
 0x305   :  { %3069 = vmatprep.subr.bf16.mxu0 %v3181_v26 }
 0x308   :  { %3071 = vmatpush3.bf16.msra.mxu0 %v3070_v34 }
 0x309   :  { %3072 = vmatprep.subr.bf16.mxu0 %v3181_v26 }
 0x30c   :  { %3074 = vmatpush3.bf16.msra.mxu0 %v3073_v36 }
 0x3b2   :  { %v2085_v30 = vpop.f32.mrb[32].mxu0 }
 0x3b3   :  { %v2882_v27 = vpop.f32.mrb[33].mxu0 }
 0x3c2   :  { %v2161_v37 = vpop.f32.mrb[34].mxu0 }
 0x3c3   :  { %v2162_v39 = vadd.f32 %v2161_v37, %v2085_v30  ;;  %v2901_v40 = vpop.f32.mrb[35].mxu0 }
 0x3c5   :  { %v2172_v26 = vadd.f32 %v2401_v38, %v2162_v39 }
 0x3c7   :  { %v2173_v41 = vmax.f32 %v2172_v26, 0.0 }
 0x3c9   :  { %2935 = vmatmul.mubr.f32.vlgmr.msra.gmra.mrb[36].mxu0 %v2173_v41 }
 0x49c   :  { %v2263_v47 = vpop.f32.mrb[36].mxu0 }
 0x49d   :  { %v2264_v48 = vadd.f32 %v2402_v44, %v2263_v47  ;;  %v2936_v50 = vpop.f32.mrb[37].mxu0 }
 0x49f   :  { %v2270_v58 = vsel %vm2269_vm4, %v2264_v48, -1e+30 }
 0x4a0   :  { %v2272_v46 = vsel %vm2271_vm5, %v2270_v58, -inf }
 0x4a1   :  { %2273 = vmax.xlane.f32.xlu0 %v2272_v46 }
 0x52e   :  { %v2274_v60 = vpop.xlane.xlu0 %2273 }
 0x52f   :  { %v2275_v62 = vsub.f32 %v2270_v58, %v2274_v60 }
 0x531   :  { %v2276_v59 = vmul.f32 1.442695, %v2275_v62 }
 0x533   :  { %3175 = vpow2.f32 %v2276_v59 }
 0x53d   :  { %v3176_v45 = vpop.eup %3175 }
 0x53e   :  { %v2278_v49 = vsel %vm2271_vm5, %v3176_v45, 0.0 }
 0x53f   :  { %2279 = vadd.xlane.f32.xlu0 %v2278_v49 }
 0x5cc   :  { %v2280_v51 = vpop.xlane.xlu0 %2279 }
 0x5cd   :  { %3177 = vrcp.f32 %v2280_v51 }
 0x5d7   :  { %v3178_v52 = vpop.eup %3177 }
 0x5d8   :  { %v2282_v53 = vmul.f32 %v3178_v52, %v3176_v45 }
 0x5da   :  { %v2284_v54 = vsel %vm2283_vm6, %v2264_v48, %v2282_v53 }
 0x5db   :  { %2285 = vst [vmem:[%s3875_s16] sm:$0x3] %v2284_v54 }

</bundles_post_ra>
